<compile_context>
chip_gen: v6e
topology: v6e:2x2x1
jax: 0.10.0
libtpu: 0.0.40
codegen_flags: <defaults>
</compile_context>

<pallas_src>
import math

import jax
import jax.numpy as jnp
from jax.experimental import pallas as pl
from jax.experimental.pallas import tpu as pltpu

# ----------------------------- model config ---------------------------------
B = 2          # batch
S = 8          # sequence length
H = 32         # hidden size
NH = 4         # attention heads
DH = H // NH   # head dim
I = 64         # intermediate (FFN) size
L = 2          # number of encoder layers
VOCAB = 100
MAX_POS = 64
N_TYPES = 2
LN_EPS = 1e-12
ATTN_SCALE = 1.0 / math.sqrt(DH)
GELU_C = math.sqrt(2.0 / math.pi)


# ----------------------------- kernel helpers --------------------------------
def _layer_norm(h, gamma, beta):
    mu = jnp.mean(h, axis=-1, keepdims=True)
    var = jnp.mean((h - mu) * (h - mu), axis=-1, keepdims=True)
    inv = jax.lax.rsqrt(var + LN_EPS)
    return (h - mu) * inv * gamma + beta


def _heads_first(t):
    """[S, NH, DH] -> [NH, S, DH] (minor/lane dim unchanged)."""
    if hasattr(pltpu, "einshape"):
        return pltpu.einshape("shd->hsd", t)
    return jnp.swapaxes(t, 0, 1)


def _heads_last(t):
    """[NH, S, DH] -> [S, NH, DH]."""
    if hasattr(pltpu, "einshape"):
        return pltpu.einshape("hsd->shd", t)
    return jnp.swapaxes(t, 0, 1)


# ----------------------------- fused Pallas kernel --------------------------
def _bert_stack_kernel(
        x_in_ref, mask_ref, emb_g_ref, emb_b_ref, pool_w_ref, pool_b_ref,
        wqkv_ref, bqkv_ref, wo_ref, bo_ref, ln1_g_ref, ln1_b_ref,
        wi_ref, bi_ref, wf_ref, bf_ref, ln2_g_ref, ln2_b_ref,
        hidden_ref, pool_ref):
    """Grid = (batch, layer).  One grid step == one encoder layer of one example.

    hidden_ref ([1, S, H] f32) is the VMEM-resident activation block of the
    current example: its output block index is constant along the inner layer
    axis, so it is carried in VMEM across the whole encoder stack and written
    back to HBM only once per example.
    """
    l = pl.program_id(1)

    # ---- layer 0: embedding LayerNorm (embedding gathers are plain-JAX glue) ----
    @pl.when(l == 0)
    def _init():
        hidden_ref[0] = _layer_norm(x_in_ref[0], emb_g_ref[...], emb_b_ref[...])

    x = hidden_ref[0]                                     # [S, H] f32 (carried)

    # ---- fused QKV projection (ATTN_SCALE pre-folded into the Q columns) ----
    xb = x.astype(jnp.bfloat16)
    qkv = jnp.dot(xb, wqkv_ref[0],
                  preferred_element_type=jnp.float32) + bqkv_ref[0]   # [S, 3H]

    # ---- batched multi-head attention: ONE score/softmax/context per layer ----
    q = _heads_first(qkv[:, 0:H].reshape(S, NH, DH)).astype(jnp.bfloat16)
    k = _heads_first(qkv[:, H:2 * H].reshape(S, NH, DH)).astype(jnp.bfloat16)
    v = _heads_first(qkv[:, 2 * H:3 * H].reshape(S, NH, DH)).astype(jnp.bfloat16)

    s = jnp.einsum("hqd,hkd->hqk", q, k,
                   preferred_element_type=jnp.float32)                # [NH, S, S]
    s = s + mask_ref[0]                      # additive key mask, broadcast once
    s = s - jnp.max(s, axis=-1, keepdims=True)
    p = jnp.exp(s)
    p = p * pl.reciprocal(jnp.sum(p, axis=-1, keepdims=True), approx=True)
    ctx = jnp.einsum("hqk,hkd->hqd", p.astype(jnp.bfloat16), v,
                     preferred_element_type=jnp.float32)              # [NH, S, DH]
    ctx = _heads_last(ctx).reshape(S, H)

    # ---- attention output projection + residual + LayerNorm ----
    attn = jnp.dot(ctx.astype(jnp.bfloat16), wo_ref[0],
                   preferred_element_type=jnp.float32) + bo_ref[0]
    x = _layer_norm(attn + x, ln1_g_ref[0], ln1_b_ref[0])

    # ---- feed-forward + residual + LayerNorm ----
    # TODO(synk): HF BERT/PhoBERT use exact erf GELU; tanh approximation is
    #             used here for guaranteed Mosaic lowering (EUP tanh).
    inter = jnp.dot(x.astype(jnp.bfloat16), wi_ref[0],
                    preferred_element_type=jnp.float32) + bi_ref[0]
    inter = 0.5 * inter * (1.0 + jnp.tanh(
        GELU_C * (inter + 0.044715 * inter * inter * inter)))
    ffn = jnp.dot(inter.astype(jnp.bfloat16), wf_ref[0],
                  preferred_element_type=jnp.float32) + bf_ref[0]
    x = _layer_norm(ffn + x, ln2_g_ref[0], ln2_b_ref[0])

    hidden_ref[0] = x                                     # carry to next layer

    # ---- last layer: fused pooler  pooled = tanh(dense(CLS)) ----
    @pl.when(l == pl.num_programs(1) - 1)
    def _pool():
        cls = x[0:1, :]                                   # CLS row of this example
        pooled = jnp.dot(cls.astype(jnp.bfloat16), pool_w_ref[...],
                         preferred_element_type=jnp.float32) + pool_b_ref[...]
        pool_ref[0] = jnp.tanh(pooled)


# ----------------------------- parameter init -------------------------------
def init_params(key):
    std = 0.02
    ks = iter(jax.random.split(key, 8 + L * 16))

    def nrm(shape):
        return std * jax.random.normal(next(ks), shape, dtype=jnp.float32)

    params = {
        "word_emb": nrm((VOCAB, H)),
        "pos_emb": nrm((MAX_POS, H)),
        "type_emb": nrm((N_TYPES, H)),
        "emb_ln_g": jnp.ones((1, H), jnp.float32),
        "emb_ln_b": jnp.zeros((1, H), jnp.float32),
        "pool_w": nrm((H, H)),
        "pool_b": jnp.zeros((1, H), jnp.float32),
        "layers": [],
    }
    for _ in range(L):
        params["layers"].append({
            "wq": nrm((H, H)), "bq": jnp.zeros((1, H), jnp.float32),
            "wk": nrm((H, H)), "bk": jnp.zeros((1, H), jnp.float32),
            "wv": nrm((H, H)), "bv": jnp.zeros((1, H), jnp.float32),
            "wo": nrm((H, H)), "bo": jnp.zeros((1, H), jnp.float32),
            "ln1_g": jnp.ones((1, H), jnp.float32),
            "ln1_b": jnp.zeros((1, H), jnp.float32),
            "wi": nrm((H, I)), "bi": jnp.zeros((1, I), jnp.float32),
            "wf": nrm((I, H)), "bf": jnp.zeros((1, H), jnp.float32),
            "ln2_g": jnp.ones((1, H), jnp.float32),
            "ln2_b": jnp.zeros((1, H), jnp.float32),
        })
    return params


def _stack(layers, name, dtype=jnp.float32):
    return jnp.stack([lp[name] for lp in layers]).astype(dtype)


def prepare_weights(params):
    """Stack per-layer weights on a leading L axis, fuse wq|wk|wv (with the
    1/sqrt(DH) attention scale folded into the Q columns / Q bias), and cast
    matmul weights to bf16 (MXU operands); biases / LN params stay f32."""
    layers = params["layers"]
    wqkv = jnp.stack([jnp.concatenate(
        [lp["wq"] * ATTN_SCALE, lp["wk"], lp["wv"]], axis=1) for lp in layers])
    bqkv = jnp.stack([jnp.concatenate(
        [lp["bq"] * ATTN_SCALE, lp["bk"], lp["bv"]], axis=1) for lp in layers])
    return {
        "word_emb": params["word_emb"],
        "pos_emb": params["pos_emb"],
        "type_emb": params["type_emb"],
        "emb_ln_g": params["emb_ln_g"],
        "emb_ln_b": params["emb_ln_b"],
        "pool_w": params["pool_w"].astype(jnp.bfloat16),
        "pool_b": params["pool_b"],
        "wqkv": wqkv.astype(jnp.bfloat16),                   # [L, H, 3H]
        "bqkv": bqkv,                                        # [L, 1, 3H]
        "wo": _stack(layers, "wo", jnp.bfloat16), "bo": _stack(layers, "bo"),
        "ln1_g": _stack(layers, "ln1_g"), "ln1_b": _stack(layers, "ln1_b"),
        "wi": _stack(layers, "wi", jnp.bfloat16), "bi": _stack(layers, "bi"),
        "wf": _stack(layers, "wf", jnp.bfloat16), "bf": _stack(layers, "bf"),
        "ln2_g": _stack(layers, "ln2_g"), "ln2_b": _stack(layers, "ln2_b"),
    }


# ----------------------------- forward ---------------------------------------
def _nbytes(a):
    return int(math.prod(a.shape)) * jnp.dtype(a.dtype).itemsize


@jax.jit
def bert_forward(w, tokens, mask, tok_type_ids):
    # Embedding-table gathers are plain-JAX glue; everything else is in-kernel.
    positions = jnp.arange(S, dtype=jnp.int32)
    emb = (w["word_emb"][tokens]
           + w["pos_emb"][positions][None, :, :]
           + w["type_emb"][tok_type_ids])                    # [B, S, H] pre-LN

    # additive attention mask built once from the raw [B, S] int mask
    mask_add = ((1.0 - mask.astype(jnp.float32)) * -10000.0).reshape(B, 1, S)

    # Explicit VMEM budget: double-buffered per-layer weights + resident
    # activation blocks (+ margin).  Tiny at toy dims, scales correctly (and
    # avoids the default scoped-VMEM cap) at real phobert-base dims.
    per_layer = sum(_nbytes(w[k]) // L for k in
                    ("wqkv", "bqkv", "wo", "bo", "ln1_g", "ln1_b",
                     "wi", "bi", "wf", "bf", "ln2_g", "ln2_b"))
    resident = 3 * _nbytes(emb) + _nbytes(mask_add)
    vmem_limit = int(max(8 << 20, 4 * per_layer + 2 * resident + (2 << 20)))

    def wspec(shape):                       # per-layer weight, layer-indexed
        return pl.BlockSpec(shape, lambda b, l: (l, 0, 0))

    def shared(shape):                      # shared (resident) 2-D parameter
        return pl.BlockSpec(shape, lambda b, l: (0, 0))

    last_hidden, pooled = pl.pallas_call(
        _bert_stack_kernel,
        out_shape=(jax.ShapeDtypeStruct((B, S, H), jnp.float32),
                   jax.ShapeDtypeStruct((B, 1, H), jnp.float32)),
        grid=(B, L),                                   # batch-parallel x layers
        in_specs=[
            pl.BlockSpec((1, S, H), lambda b, l: (b, 0, 0)),   # embeddings (aliased)
            pl.BlockSpec((1, 1, S), lambda b, l: (b, 0, 0)),   # additive mask
            shared((1, H)),                                    # emb_ln_g
            shared((1, H)),                                    # emb_ln_b
            shared((H, H)),                                    # pool_w
            shared((1, H)),                                    # pool_b
            wspec((1, H, 3 * H)),                              # wqkv
            wspec((1, 1, 3 * H)),                              # bqkv
            wspec((1, H, H)),                                  # wo
            wspec((1, 1, H)),                                  # bo
            wspec((1, 1, H)),                                  # ln1_g
            wspec((1, 1, H)),                                  # ln1_b
            wspec((1, H, I)),                                  # wi
            wspec((1, 1, I)),                                  # bi
            wspec((1, I, H)),                                  # wf
            wspec((1, 1, H)),                                  # bf
            wspec((1, 1, H)),                                  # ln2_g
            wspec((1, 1, H)),                                  # ln2_b
        ],
        out_specs=(pl.BlockSpec((1, S, H), lambda b, l: (b, 0, 0)),   # hidden slab
                   pl.BlockSpec((1, 1, H), lambda b, l: (b, 0, 0))),  # pooled
        input_output_aliases={0: 0},        # embeddings buffer -> hidden output
        compiler_params=pltpu.CompilerParams(
            dimension_semantics=("parallel", "arbitrary"),
            vmem_limit_bytes=vmem_limit),
    )(emb, mask_add, w["emb_ln_g"], w["emb_ln_b"], w["pool_w"], w["pool_b"],
      w["wqkv"], w["bqkv"], w["wo"], w["bo"], w["ln1_g"], w["ln1_b"],
      w["wi"], w["bi"], w["wf"], w["bf"], w["ln2_g"], w["ln2_b"])

    return last_hidden, pooled.reshape(B, H)


# ----------------------------- pure-JAX reference -----------------------------
def bert_forward_ref(w, tokens, mask, tok_type_ids):
    """f32 reference using the same prepared weights (for validation)."""
    f32 = jnp.float32
    positions = jnp.arange(S, dtype=jnp.int32)
    emb = (w["word_emb"][tokens] + w["pos_emb"][positions][None, :, :]
           + w["type_emb"][tok_type_ids])
    mask_add = ((1.0 - mask.astype(f32)) * -10000.0)[:, None, None, :]

    def ln(h, g, b):
        mu = h.mean(-1, keepdims=True)
        var = ((h - mu) ** 2).mean(-1, keepdims=True)
        return (h - mu) / jnp.sqrt(var + LN_EPS) * g + b

    x = ln(emb, w["emb_ln_g"][0], w["emb_ln_b"][0])
    for l in range(L):
        qkv = x @ w["wqkv"][l].astype(f32) + w["bqkv"][l]
        q = qkv[..., 0:H].reshape(B, S, NH, DH).transpose(0, 2, 1, 3)
        k = qkv[..., H:2 * H].reshape(B, S, NH, DH).transpose(0, 2, 1, 3)
        v = qkv[..., 2 * H:].reshape(B, S, NH, DH).transpose(0, 2, 1, 3)
        p = jax.nn.softmax(jnp.einsum("bhqd,bhkd->bhqk", q, k) + mask_add, axis=-1)
        ctx = jnp.einsum("bhqk,bhkd->bhqd", p, v).transpose(0, 2, 1, 3).reshape(B, S, H)
        attn = ctx @ w["wo"][l].astype(f32) + w["bo"][l]
        x = ln(attn + x, w["ln1_g"][l], w["ln1_b"][l])
        inter = x @ w["wi"][l].astype(f32) + w["bi"][l]
        inter = 0.5 * inter * (1.0 + jnp.tanh(GELU_C * (inter + 0.044715 * inter ** 3)))
        ffn = inter @ w["wf"][l].astype(f32) + w["bf"][l]
        x = ln(ffn + x, w["ln2_g"][l], w["ln2_b"][l])
    pooled = jnp.tanh(x[:, 0, :] @ w["pool_w"].astype(f32) + w["pool_b"])
    return x, pooled


# ----------------------------- main ------------------------------------------
if __name__ == "__main__":
    key = jax.random.PRNGKey(0)
    k_param, k_tok = jax.random.split(key)

    params = init_params(k_param)
    weights = prepare_weights(params)

    bert_tokens = jax.random.randint(k_tok, (B, S), 0, VOCAB, dtype=jnp.int32)
    bert_mask = jnp.concatenate(
        [jnp.ones((B, S - 2), jnp.int32), jnp.zeros((B, 2), jnp.int32)], axis=1)
    bert_tok_typeid = jnp.zeros((B, S), jnp.int32)

    last_hidden, pooler_out = bert_forward(weights, bert_tokens, bert_mask,
                                           bert_tok_typeid)
    jax.block_until_ready((last_hidden, pooler_out))

    assert last_hidden.shape == (B, S, H)
    assert pooler_out.shape == (B, H)
    assert bool(jnp.all(jnp.isfinite(last_hidden)))
    assert bool(jnp.all(jnp.isfinite(pooler_out)))

    # Validate against the pure-JAX f32 reference (bf16 MXU operands + the
    # approx-reciprocal softmax give small, bounded deviations).
    ref_hidden, ref_pooled = bert_forward_ref(weights, bert_tokens, bert_mask,
                                              bert_tok_typeid)
    err_h = float(jnp.max(jnp.abs(last_hidden - ref_hidden)))
    err_p = float(jnp.max(jnp.abs(pooler_out - ref_pooled)))
    assert err_h < 5e-2 and err_p < 5e-2, (err_h, err_p)

    print("KERNEL_OK")
</pallas_src>

<mosaic_0001>
module attributes {stable_mosaic.version = 11 : i64} {
  func.func @_bert_stack_kernel(%arg0: i32, %arg1: i32, %arg2: memref<1x8x32xf32, #tpu.memory_space<vmem>>, %arg3: memref<1x1x8xf32, #tpu.memory_space<vmem>>, %arg4: memref<1x32xf32, #tpu.memory_space<vmem>>, %arg5: memref<1x32xf32, #tpu.memory_space<vmem>>, %arg6: memref<32x32xbf16, #tpu.memory_space<vmem>>, %arg7: memref<1x32xf32, #tpu.memory_space<vmem>>, %arg8: memref<1x32x96xbf16, #tpu.memory_space<vmem>>, %arg9: memref<1x1x96xf32, #tpu.memory_space<vmem>>, %arg10: memref<1x32x32xbf16, #tpu.memory_space<vmem>>, %arg11: memref<1x1x32xf32, #tpu.memory_space<vmem>>, %arg12: memref<1x1x32xf32, #tpu.memory_space<vmem>>, %arg13: memref<1x1x32xf32, #tpu.memory_space<vmem>>, %arg14: memref<1x32x64xbf16, #tpu.memory_space<vmem>>, %arg15: memref<1x1x64xf32, #tpu.memory_space<vmem>>, %arg16: memref<1x64x32xbf16, #tpu.memory_space<vmem>>, %arg17: memref<1x1x32xf32, #tpu.memory_space<vmem>>, %arg18: memref<1x1x32xf32, #tpu.memory_space<vmem>>, %arg19: memref<1x1x32xf32, #tpu.memory_space<vmem>>, %arg20: memref<1x8x32xf32, #tpu.memory_space<vmem>>, %arg21: memref<1x1x32xf32, #tpu.memory_space<vmem>>) attributes {dimension_semantics = [#tpu.dimension_semantics<parallel>, #tpu.dimension_semantics<arbitrary>], iteration_bounds = array<i64: 2, 2>, scalar_prefetch = 0 : i64, scratch_operands = 0 : i64, tpu.core_type = #tpu.core_type<tc>, window_params = [{transform_indices = @transform_0, window_bounds = array<i64: 1, 8, 32>}, {transform_indices = @transform_1, window_bounds = array<i64: 1, 1, 8>}, {pipeline_mode = #tpu.pipeline_mode<synchronous>, transform_indices = @transform_2, window_bounds = array<i64: 1, 32>}, {pipeline_mode = #tpu.pipeline_mode<synchronous>, transform_indices = @transform_3, window_bounds = array<i64: 1, 32>}, {pipeline_mode = #tpu.pipeline_mode<synchronous>, transform_indices = @transform_4, window_bounds = array<i64: 32, 32>}, {pipeline_mode = #tpu.pipeline_mode<synchronous>, transform_indices = @transform_5, window_bounds = array<i64: 1, 32>}, {transform_indices = @transform_6, window_bounds = array<i64: 1, 32, 96>}, {transform_indices = @transform_7, window_bounds = array<i64: 1, 1, 96>}, {transform_indices = @transform_8, window_bounds = array<i64: 1, 32, 32>}, {transform_indices = @transform_9, window_bounds = array<i64: 1, 1, 32>}, {transform_indices = @transform_10, window_bounds = array<i64: 1, 1, 32>}, {transform_indices = @transform_11, window_bounds = array<i64: 1, 1, 32>}, {transform_indices = @transform_12, window_bounds = array<i64: 1, 32, 64>}, {transform_indices = @transform_13, window_bounds = array<i64: 1, 1, 64>}, {transform_indices = @transform_14, window_bounds = array<i64: 1, 64, 32>}, {transform_indices = @transform_15, window_bounds = array<i64: 1, 1, 32>}, {transform_indices = @transform_16, window_bounds = array<i64: 1, 1, 32>}, {transform_indices = @transform_17, window_bounds = array<i64: 1, 1, 32>}, {transform_indices = @transform_18, window_bounds = array<i64: 1, 8, 32>}, {transform_indices = @transform_19, window_bounds = array<i64: 1, 1, 32>}]} {
    %c0_i32 = arith.constant 0 : i32
    %0 = arith.cmpi eq, %arg1, %c0_i32 : i32
    %1 = arith.extui %0 : i1 to i32
    %c0_i32_0 = arith.constant 0 : i32
    %2 = arith.cmpi ne, %1, %c0_i32_0 : i32
    scf.if %2 {
      %c0_67 = arith.constant 0 : index
      %c0_68 = arith.constant 0 : index
      %c0_69 = arith.constant 0 : index
      %146 = vector.load %arg2[%c0_67, %c0_68, %c0_69] : memref<1x8x32xf32, #tpu.memory_space<vmem>>, vector<1x8x32xf32>
      %147 = vector.shape_cast %146 : vector<1x8x32xf32> to vector<8x32xf32>
      %c0_70 = arith.constant 0 : index
      %c0_71 = arith.constant 0 : index
      %148 = vector.load %arg4[%c0_70, %c0_71] : memref<1x32xf32, #tpu.memory_space<vmem>>, vector<1x32xf32>
      %c0_72 = arith.constant 0 : index
      %c0_73 = arith.constant 0 : index
      %149 = vector.load %arg5[%c0_72, %c0_73] : memref<1x32xf32, #tpu.memory_space<vmem>>, vector<1x32xf32>
      %cst_74 = arith.constant dense<0.000000e+00> : vector<8xf32>
      %150 = vector.multi_reduction <add>, %147, %cst_74 [1] : vector<8x32xf32> to vector<8xf32>
      %151 = vector.shape_cast %150 : vector<8xf32> to vector<8x1xf32>
      %cst_75 = arith.constant 3.200000e+01 : f32
      %152 = vector.broadcast %cst_75 : f32 to vector<8x1xf32>
      %153 = arith.divf %151, %152 : vector<8x1xf32>
      %154 = vector.broadcast %153 : vector<8x1xf32> to vector<8x32xf32>
      %155 = arith.subf %147, %154 : vector<8x32xf32>
      %156 = vector.broadcast %153 : vector<8x1xf32> to vector<8x32xf32>
      %157 = arith.subf %147, %156 : vector<8x32xf32>
      %158 = arith.mulf %155, %157 : vector<8x32xf32>
      %cst_76 = arith.constant dense<0.000000e+00> : vector<8xf32>
      %159 = vector.multi_reduction <add>, %158, %cst_76 [1] : vector<8x32xf32> to vector<8xf32>
      %160 = vector.shape_cast %159 : vector<8xf32> to vector<8x1xf32>
      %cst_77 = arith.constant 3.200000e+01 : f32
      %161 = vector.broadcast %cst_77 : f32 to vector<8x1xf32>
      %162 = arith.divf %160, %161 : vector<8x1xf32>
      %cst_78 = arith.constant 9.99999996E-13 : f32
      %163 = vector.broadcast %cst_78 : f32 to vector<8x1xf32>
      %164 = arith.addf %162, %163 : vector<8x1xf32>
      %165 = math.rsqrt %164 : vector<8x1xf32>
      %166 = vector.broadcast %153 : vector<8x1xf32> to vector<8x32xf32>
      %167 = arith.subf %147, %166 : vector<8x32xf32>
      %168 = vector.broadcast %165 : vector<8x1xf32> to vector<8x32xf32>
      %169 = arith.mulf %167, %168 : vector<8x32xf32>
      %170 = vector.broadcast %148 : vector<1x32xf32> to vector<8x32xf32>
      %171 = arith.mulf %169, %170 : vector<8x32xf32>
      %172 = vector.broadcast %149 : vector<1x32xf32> to vector<8x32xf32>
      %173 = arith.addf %171, %172 : vector<8x32xf32>
      %c0_79 = arith.constant 0 : index
      %c0_80 = arith.constant 0 : index
      %c0_81 = arith.constant 0 : index
      %174 = vector.load %arg20[%c0_79, %c0_80, %c0_81] : memref<1x8x32xf32, #tpu.memory_space<vmem>>, vector<1x8x32xf32>
      %175 = vector.shape_cast %174 : vector<1x8x32xf32> to vector<8x32xf32>
      %176 = vector.shape_cast %173 : vector<8x32xf32> to vector<1x8x32xf32>
      tpu.vector_store %arg20[%c0_79, %c0_80, %c0_81], %176 {strides = array<i32>} : memref<1x8x32xf32, #tpu.memory_space<vmem>>, vector<1x8x32xf32>,
    } else {
    }
    %c0 = arith.constant 0 : index
    %c0_1 = arith.constant 0 : index
    %c0_2 = arith.constant 0 : index
    %3 = vector.load %arg20[%c0, %c0_1, %c0_2] : memref<1x8x32xf32, #tpu.memory_space<vmem>>, vector<1x8x32xf32>
    %4 = vector.shape_cast %3 : vector<1x8x32xf32> to vector<8x32xf32>
    %5 = arith.truncf %4 : vector<8x32xf32> to vector<8x32xbf16>
    %c0_3 = arith.constant 0 : index
    %c0_4 = arith.constant 0 : index
    %c0_5 = arith.constant 0 : index
    %6 = vector.load %arg8[%c0_3, %c0_4, %c0_5] : memref<1x32x96xbf16, #tpu.memory_space<vmem>>, vector<1x32x96xbf16>
    %7 = vector.shape_cast %6 : vector<1x32x96xbf16> to vector<32x96xbf16>
    %cst = arith.constant dense<0.000000e+00> : vector<8x96xf32>
    %8 = tpu.matmul %5, %7, %cst {dimension_numbers = #tpu.dot_dimension_numbers<[1], [0], [0], [1], [0, 0, 1, 1], [], []>} : vector<8x32xbf16>, vector<32x96xbf16>, vector<8x96xf32> -> vector<8x96xf32>
    %c0_6 = arith.constant 0 : index
    %c0_7 = arith.constant 0 : index
    %c0_8 = arith.constant 0 : index
    %9 = vector.load %arg9[%c0_6, %c0_7, %c0_8] : memref<1x1x96xf32, #tpu.memory_space<vmem>>, vector<1x1x96xf32>
    %10 = vector.shape_cast %9 : vector<1x1x96xf32> to vector<1x96xf32>
    %11 = vector.broadcast %10 : vector<1x96xf32> to vector<8x96xf32>
    %12 = arith.addf %8, %11 : vector<8x96xf32>
    %13 = vector.extract_strided_slice %12 {offsets = [0, 0], sizes = [8, 32], strides = [1, 1]} : vector<8x96xf32> to vector<8x32xf32>
    %14 = vector.shape_cast %13 : vector<8x32xf32> to vector<8x4x8xf32>
    %15 = tpu.transpose %14, [1, 0, 2] : vector<8x4x8xf32> -> vector<4x8x8xf32>
    %16 = arith.truncf %15 : vector<4x8x8xf32> to vector<4x8x8xbf16>
    %17 = vector.extract_strided_slice %12 {offsets = [0, 32], sizes = [8, 32], strides = [1, 1]} : vector<8x96xf32> to vector<8x32xf32>
    %18 = vector.shape_cast %17 : vector<8x32xf32> to vector<8x4x8xf32>
    %19 = tpu.transpose %18, [1, 0, 2] : vector<8x4x8xf32> -> vector<4x8x8xf32>
    %20 = arith.truncf %19 : vector<4x8x8xf32> to vector<4x8x8xbf16>
    %21 = vector.extract_strided_slice %12 {offsets = [0, 64], sizes = [8, 32], strides = [1, 1]} : vector<8x96xf32> to vector<8x32xf32>
    %22 = vector.shape_cast %21 : vector<8x32xf32> to vector<8x4x8xf32>
    %23 = tpu.transpose %22, [1, 0, 2] : vector<8x4x8xf32> -> vector<4x8x8xf32>
    %24 = arith.truncf %23 : vector<4x8x8xf32> to vector<4x8x8xbf16>
    "tpu.trace_start"() <{level = 10 : i32, message = "hqd,hkd->hqk"}> : () -> ()
    %cst_9 = arith.constant dense<0.000000e+00> : vector<4x8x8xf32>
    %25 = tpu.matmul %16, %20, %cst_9 {dimension_numbers = #tpu.dot_dimension_numbers<[2], [2], [1], [1], [0, 0, 0, 1, 1, 1], [0], [0]>} : vector<4x8x8xbf16>, vector<4x8x8xbf16>, vector<4x8x8xf32> -> vector<4x8x8xf32>
    "tpu.trace_stop"() : () -> ()
    %c0_10 = arith.constant 0 : index
    %c0_11 = arith.constant 0 : index
    %c0_12 = arith.constant 0 : index
    %26 = vector.load %arg3[%c0_10, %c0_11, %c0_12] : memref<1x1x8xf32, #tpu.memory_space<vmem>>, vector<1x1x8xf32>
    %27 = vector.shape_cast %26 : vector<1x1x8xf32> to vector<1x8xf32>
    %28 = vector.shape_cast %27 : vector<1x8xf32> to vector<1x1x8xf32>
    %29 = vector.broadcast %28 : vector<1x1x8xf32> to vector<4x8x8xf32>
    %30 = arith.addf %25, %29 : vector<4x8x8xf32>
    %cst_13 = arith.constant dense<0xFF800000> : vector<4x8xf32>
    %31 = vector.multi_reduction <maximumf>, %30, %cst_13 [2] : vector<4x8x8xf32> to vector<4x8xf32>
    %32 = vector.shape_cast %31 : vector<4x8xf32> to vector<4x8x1xf32>
    %33 = vector.broadcast %32 : vector<4x8x1xf32> to vector<4x8x8xf32>
    %34 = arith.subf %30, %33 : vector<4x8x8xf32>
    %35 = math.exp %34 : vector<4x8x8xf32>
    %cst_14 = arith.constant dense<0.000000e+00> : vector<4x8xf32>
    %36 = vector.multi_reduction <add>, %35, %cst_14 [2] : vector<4x8x8xf32> to vector<4x8xf32>
    %37 = vector.shape_cast %36 : vector<4x8xf32> to vector<4x8x1xf32>
    %38 = tpu.reciprocal %37 {approx = true} : vector<4x8x1xf32> -> vector<4x8x1xf32>
    %39 = vector.broadcast %38 : vector<4x8x1xf32> to vector<4x8x8xf32>
    %40 = arith.mulf %35, %39 : vector<4x8x8xf32>
    %41 = arith.truncf %40 : vector<4x8x8xf32> to vector<4x8x8xbf16>
    "tpu.trace_start"() <{level = 10 : i32, message = "hqk,hkd->hqd"}> : () -> ()
    %cst_15 = arith.constant dense<0.000000e+00> : vector<4x8x8xf32>
    %42 = tpu.matmul %41, %24, %cst_15 {dimension_numbers = #tpu.dot_dimension_numbers<[2], [1], [1], [2], [0, 0, 0, 1, 1, 2], [0], [0]>} : vector<4x8x8xbf16>, vector<4x8x8xbf16>, vector<4x8x8xf32> -> vector<4x8x8xf32>
    "tpu.trace_stop"() : () -> ()
    %43 = tpu.transpose %42, [1, 0, 2] : vector<4x8x8xf32> -> vector<8x4x8xf32>
    %44 = vector.shape_cast %43 : vector<8x4x8xf32> to vector<8x32xf32>
    %45 = arith.truncf %44 : vector<8x32xf32> to vector<8x32xbf16>
    %c0_16 = arith.constant 0 : index
    %c0_17 = arith.constant 0 : index
    %c0_18 = arith.constant 0 : index
    %46 = vector.load %arg10[%c0_16, %c0_17, %c0_18] : memref<1x32x32xbf16, #tpu.memory_space<vmem>>, vector<1x32x32xbf16>
    %47 = vector.shape_cast %46 : vector<1x32x32xbf16> to vector<32x32xbf16>
    %cst_19 = arith.constant dense<0.000000e+00> : vector<8x32xf32>
    %48 = tpu.matmul %45, %47, %cst_19 {dimension_numbers = #tpu.dot_dimension_numbers<[1], [0], [0], [1], [0, 0, 1, 1], [], []>} : vector<8x32xbf16>, vector<32x32xbf16>, vector<8x32xf32> -> vector<8x32xf32>
    %c0_20 = arith.constant 0 : index
    %c0_21 = arith.constant 0 : index
    %c0_22 = arith.constant 0 : index
    %49 = vector.load %arg11[%c0_20, %c0_21, %c0_22] : memref<1x1x32xf32, #tpu.memory_space<vmem>>, vector<1x1x32xf32>
    %50 = vector.shape_cast %49 : vector<1x1x32xf32> to vector<1x32xf32>
    %51 = vector.broadcast %50 : vector<1x32xf32> to vector<8x32xf32>
    %52 = arith.addf %48, %51 : vector<8x32xf32>
    %53 = arith.addf %52, %4 : vector<8x32xf32>
    %c0_23 = arith.constant 0 : index
    %c0_24 = arith.constant 0 : index
    %c0_25 = arith.constant 0 : index
    %54 = vector.load %arg12[%c0_23, %c0_24, %c0_25] : memref<1x1x32xf32, #tpu.memory_space<vmem>>, vector<1x1x32xf32>
    %55 = vector.shape_cast %54 : vector<1x1x32xf32> to vector<1x32xf32>
    %c0_26 = arith.constant 0 : index
    %c0_27 = arith.constant 0 : index
    %c0_28 = arith.constant 0 : index
    %56 = vector.load %arg13[%c0_26, %c0_27, %c0_28] : memref<1x1x32xf32, #tpu.memory_space<vmem>>, vector<1x1x32xf32>
    %57 = vector.shape_cast %56 : vector<1x1x32xf32> to vector<1x32xf32>
    %cst_29 = arith.constant dense<0.000000e+00> : vector<8xf32>
    %58 = vector.multi_reduction <add>, %53, %cst_29 [1] : vector<8x32xf32> to vector<8xf32>
    %59 = vector.shape_cast %58 : vector<8xf32> to vector<8x1xf32>
    %cst_30 = arith.constant 3.200000e+01 : f32
    %60 = vector.broadcast %cst_30 : f32 to vector<8x1xf32>
    %61 = arith.divf %59, %60 : vector<8x1xf32>
    %62 = vector.broadcast %61 : vector<8x1xf32> to vector<8x32xf32>
    %63 = arith.subf %53, %62 : vector<8x32xf32>
    %64 = vector.broadcast %61 : vector<8x1xf32> to vector<8x32xf32>
    %65 = arith.subf %53, %64 : vector<8x32xf32>
    %66 = arith.mulf %63, %65 : vector<8x32xf32>
    %cst_31 = arith.constant dense<0.000000e+00> : vector<8xf32>
    %67 = vector.multi_reduction <add>, %66, %cst_31 [1] : vector<8x32xf32> to vector<8xf32>
    %68 = vector.shape_cast %67 : vector<8xf32> to vector<8x1xf32>
    %cst_32 = arith.constant 3.200000e+01 : f32
    %69 = vector.broadcast %cst_32 : f32 to vector<8x1xf32>
    %70 = arith.divf %68, %69 : vector<8x1xf32>
    %cst_33 = arith.constant 9.99999996E-13 : f32
    %71 = vector.broadcast %cst_33 : f32 to vector<8x1xf32>
    %72 = arith.addf %70, %71 : vector<8x1xf32>
    %73 = math.rsqrt %72 : vector<8x1xf32>
    %74 = vector.broadcast %61 : vector<8x1xf32> to vector<8x32xf32>
    %75 = arith.subf %53, %74 : vector<8x32xf32>
    %76 = vector.broadcast %73 : vector<8x1xf32> to vector<8x32xf32>
    %77 = arith.mulf %75, %76 : vector<8x32xf32>
    %78 = vector.broadcast %55 : vector<1x32xf32> to vector<8x32xf32>
    %79 = arith.mulf %77, %78 : vector<8x32xf32>
    %80 = vector.broadcast %57 : vector<1x32xf32> to vector<8x32xf32>
    %81 = arith.addf %79, %80 : vector<8x32xf32>
    %82 = arith.truncf %81 : vector<8x32xf32> to vector<8x32xbf16>
    %c0_34 = arith.constant 0 : index
    %c0_35 = arith.constant 0 : index
    %c0_36 = arith.constant 0 : index
    %83 = vector.load %arg14[%c0_34, %c0_35, %c0_36] : memref<1x32x64xbf16, #tpu.memory_space<vmem>>, vector<1x32x64xbf16>
    %84 = vector.shape_cast %83 : vector<1x32x64xbf16> to vector<32x64xbf16>
    %cst_37 = arith.constant dense<0.000000e+00> : vector<8x64xf32>
    %85 = tpu.matmul %82, %84, %cst_37 {dimension_numbers = #tpu.dot_dimension_numbers<[1], [0], [0], [1], [0, 0, 1, 1], [], []>} : vector<8x32xbf16>, vector<32x64xbf16>, vector<8x64xf32> -> vector<8x64xf32>
    %c0_38 = arith.constant 0 : index
    %c0_39 = arith.constant 0 : index
    %c0_40 = arith.constant 0 : index
    %86 = vector.load %arg15[%c0_38, %c0_39, %c0_40] : memref<1x1x64xf32, #tpu.memory_space<vmem>>, vector<1x1x64xf32>
    %87 = vector.shape_cast %86 : vector<1x1x64xf32> to vector<1x64xf32>
    %88 = vector.broadcast %87 : vector<1x64xf32> to vector<8x64xf32>
    %89 = arith.addf %85, %88 : vector<8x64xf32>
    %cst_41 = arith.constant 5.000000e-01 : f32
    %90 = vector.broadcast %cst_41 : f32 to vector<8x64xf32>
    %91 = arith.mulf %90, %89 : vector<8x64xf32>
    %cst_42 = arith.constant 4.471500e-02 : f32
    %92 = vector.broadcast %cst_42 : f32 to vector<8x64xf32>
    %93 = arith.mulf %92, %89 : vector<8x64xf32>
    %94 = arith.mulf %93, %89 : vector<8x64xf32>
    %95 = arith.mulf %94, %89 : vector<8x64xf32>
    %96 = arith.addf %89, %95 : vector<8x64xf32>
    %cst_43 = arith.constant 0.797884583 : f32
    %97 = vector.broadcast %cst_43 : f32 to vector<8x64xf32>
    %98 = arith.mulf %97, %96 : vector<8x64xf32>
    %99 = math.tanh %98 : vector<8x64xf32>
    %cst_44 = arith.constant 1.000000e+00 : f32
    %100 = vector.broadcast %cst_44 : f32 to vector<8x64xf32>
    %101 = arith.addf %100, %99 : vector<8x64xf32>
    %102 = arith.mulf %91, %101 : vector<8x64xf32>
    %103 = arith.truncf %102 : vector<8x64xf32> to vector<8x64xbf16>
    %c0_45 = arith.constant 0 : index
    %c0_46 = arith.constant 0 : index
    %c0_47 = arith.constant 0 : index
    %104 = vector.load %arg16[%c0_45, %c0_46, %c0_47] : memref<1x64x32xbf16, #tpu.memory_space<vmem>>, vector<1x64x32xbf16>
    %105 = vector.shape_cast %104 : vector<1x64x32xbf16> to vector<64x32xbf16>
    %cst_48 = arith.constant dense<0.000000e+00> : vector<8x32xf32>
    %106 = tpu.matmul %103, %105, %cst_48 {dimension_numbers = #tpu.dot_dimension_numbers<[1], [0], [0], [1], [0, 0, 1, 1], [], []>} : vector<8x64xbf16>, vector<64x32xbf16>, vector<8x32xf32> -> vector<8x32xf32>
    %c0_49 = arith.constant 0 : index
    %c0_50 = arith.constant 0 : index
    %c0_51 = arith.constant 0 : index
    %107 = vector.load %arg17[%c0_49, %c0_50, %c0_51] : memref<1x1x32xf32, #tpu.memory_space<vmem>>, vector<1x1x32xf32>
    %108 = vector.shape_cast %107 : vector<1x1x32xf32> to vector<1x32xf32>
    %109 = vector.broadcast %108 : vector<1x32xf32> to vector<8x32xf32>
    %110 = arith.addf %106, %109 : vector<8x32xf32>
    %111 = arith.addf %110, %81 : vector<8x32xf32>
    %c0_52 = arith.constant 0 : index
    %c0_53 = arith.constant 0 : index
    %c0_54 = arith.constant 0 : index
    %112 = vector.load %arg18[%c0_52, %c0_53, %c0_54] : memref<1x1x32xf32, #tpu.memory_space<vmem>>, vector<1x1x32xf32>
    %113 = vector.shape_cast %112 : vector<1x1x32xf32> to vector<1x32xf32>
    %c0_55 = arith.constant 0 : index
    %c0_56 = arith.constant 0 : index
    %c0_57 = arith.constant 0 : index
    %114 = vector.load %arg19[%c0_55, %c0_56, %c0_57] : memref<1x1x32xf32, #tpu.memory_space<vmem>>, vector<1x1x32xf32>
    %115 = vector.shape_cast %114 : vector<1x1x32xf32> to vector<1x32xf32>
    %cst_58 = arith.constant dense<0.000000e+00> : vector<8xf32>
    %116 = vector.multi_reduction <add>, %111, %cst_58 [1] : vector<8x32xf32> to vector<8xf32>
    %117 = vector.shape_cast %116 : vector<8xf32> to vector<8x1xf32>
    %cst_59 = arith.constant 3.200000e+01 : f32
    %118 = vector.broadcast %cst_59 : f32 to vector<8x1xf32>
    %119 = arith.divf %117, %118 : vector<8x1xf32>
    %120 = vector.broadcast %119 : vector<8x1xf32> to vector<8x32xf32>
    %121 = arith.subf %111, %120 : vector<8x32xf32>
    %122 = vector.broadcast %119 : vector<8x1xf32> to vector<8x32xf32>
    %123 = arith.subf %111, %122 : vector<8x32xf32>
    %124 = arith.mulf %121, %123 : vector<8x32xf32>
    %cst_60 = arith.constant dense<0.000000e+00> : vector<8xf32>
    %125 = vector.multi_reduction <add>, %124, %cst_60 [1] : vector<8x32xf32> to vector<8xf32>
    %126 = vector.shape_cast %125 : vector<8xf32> to vector<8x1xf32>
    %cst_61 = arith.constant 3.200000e+01 : f32
    %127 = vector.broadcast %cst_61 : f32 to vector<8x1xf32>
    %128 = arith.divf %126, %127 : vector<8x1xf32>
    %cst_62 = arith.constant 9.99999996E-13 : f32
    %129 = vector.broadcast %cst_62 : f32 to vector<8x1xf32>
    %130 = arith.addf %128, %129 : vector<8x1xf32>
    %131 = math.rsqrt %130 : vector<8x1xf32>
    %132 = vector.broadcast %119 : vector<8x1xf32> to vector<8x32xf32>
    %133 = arith.subf %111, %132 : vector<8x32xf32>
    %134 = vector.broadcast %131 : vector<8x1xf32> to vector<8x32xf32>
    %135 = arith.mulf %133, %134 : vector<8x32xf32>
    %136 = vector.broadcast %113 : vector<1x32xf32> to vector<8x32xf32>
    %137 = arith.mulf %135, %136 : vector<8x32xf32>
    %138 = vector.broadcast %115 : vector<1x32xf32> to vector<8x32xf32>
    %139 = arith.addf %137, %138 : vector<8x32xf32>
    %c0_63 = arith.constant 0 : index
    %c0_64 = arith.constant 0 : index
    %c0_65 = arith.constant 0 : index
    %140 = vector.load %arg20[%c0_63, %c0_64, %c0_65] : memref<1x8x32xf32, #tpu.memory_space<vmem>>, vector<1x8x32xf32>
    %141 = vector.shape_cast %140 : vector<1x8x32xf32> to vector<8x32xf32>
    %142 = vector.shape_cast %139 : vector<8x32xf32> to vector<1x8x32xf32>
    tpu.vector_store %arg20[%c0_63, %c0_64, %c0_65], %142 {strides = array<i32>} : memref<1x8x32xf32, #tpu.memory_space<vmem>>, vector<1x8x32xf32>,
    %c1_i32 = arith.constant 1 : i32
    %143 = arith.cmpi eq, %arg1, %c1_i32 : i32
    %144 = arith.extui %143 : i1 to i32
    %c0_i32_66 = arith.constant 0 : i32
    %145 = arith.cmpi ne, %144, %c0_i32_66 : i32
    scf.if %145 {
      %146 = vector.extract_strided_slice %139 {offsets = [0, 0], sizes = [1, 32], strides = [1, 1]} : vector<8x32xf32> to vector<1x32xf32>
      %147 = arith.truncf %146 : vector<1x32xf32> to vector<1x32xbf16>
      %c0_67 = arith.constant 0 : index
      %c0_68 = arith.constant 0 : index
      %148 = vector.load %arg6[%c0_67, %c0_68] : memref<32x32xbf16, #tpu.memory_space<vmem>>, vector<32x32xbf16>
      %cst_69 = arith.constant dense<0.000000e+00> : vector<1x32xf32>
      %149 = tpu.matmul %147, %148, %cst_69 {dimension_numbers = #tpu.dot_dimension_numbers<[1], [0], [0], [1], [0, 0, 1, 1], [], []>} : vector<1x32xbf16>, vector<32x32xbf16>, vector<1x32xf32> -> vector<1x32xf32>
      %c0_70 = arith.constant 0 : index
      %c0_71 = arith.constant 0 : index
      %150 = vector.load %arg7[%c0_70, %c0_71] : memref<1x32xf32, #tpu.memory_space<vmem>>, vector<1x32xf32>
      %151 = arith.addf %149, %150 : vector<1x32xf32>
      %152 = math.tanh %151 : vector<1x32xf32>
      %c0_72 = arith.constant 0 : index
      %c0_73 = arith.constant 0 : index
      %c0_74 = arith.constant 0 : index
      %153 = vector.load %arg21[%c0_72, %c0_73, %c0_74] : memref<1x1x32xf32, #tpu.memory_space<vmem>>, vector<1x1x32xf32>
      %154 = vector.shape_cast %153 : vector<1x1x32xf32> to vector<1x32xf32>
      %155 = vector.shape_cast %152 : vector<1x32xf32> to vector<1x1x32xf32>
      tpu.vector_store %arg21[%c0_72, %c0_73, %c0_74], %155 {strides = array<i32>} : memref<1x1x32xf32, #tpu.memory_space<vmem>>, vector<1x1x32xf32>,
    } else {
    }
    return
  }
  func.func @transform_0(%arg0: i32, %arg1: i32) -> (i32, i32, i32) {
    %c0_i32 = arith.constant 0 : i32
    %c0_i32_0 = arith.constant 0 : i32
    %c0_i32_1 = arith.constant 0 : i32
    return %arg0, %c0_i32, %c0_i32_0 : i32, i32, i32
  }
  func.func @transform_1(%arg0: i32, %arg1: i32) -> (i32, i32, i32) {
    %c0_i32 = arith.constant 0 : i32
    %c0_i32_0 = arith.constant 0 : i32
    %c0_i32_1 = arith.constant 0 : i32
    return %arg0, %c0_i32, %c0_i32_0 : i32, i32, i32
  }
  func.func @transform_2(%arg0: i32, %arg1: i32) -> (i32, i32) {
    %c0_i32 = arith.constant 0 : i32
    %c0_i32_0 = arith.constant 0 : i32
    %c0_i32_1 = arith.constant 0 : i32
    return %c0_i32, %c0_i32_0 : i32, i32
  }
  func.func @transform_3(%arg0: i32, %arg1: i32) -> (i32, i32) {
    %c0_i32 = arith.constant 0 : i32
    %c0_i32_0 = arith.constant 0 : i32
    %c0_i32_1 = arith.constant 0 : i32
    return %c0_i32, %c0_i32_0 : i32, i32
  }
  func.func @transform_4(%arg0: i32, %arg1: i32) -> (i32, i32) {
    %c0_i32 = arith.constant 0 : i32
    %c0_i32_0 = arith.constant 0 : i32
    %c0_i32_1 = arith.constant 0 : i32
    return %c0_i32, %c0_i32_0 : i32, i32
  }
  func.func @transform_5(%arg0: i32, %arg1: i32) -> (i32, i32) {
    %c0_i32 = arith.constant 0 : i32
    %c0_i32_0 = arith.constant 0 : i32
    %c0_i32_1 = arith.constant 0 : i32
    return %c0_i32, %c0_i32_0 : i32, i32
  }
  func.func @transform_6(%arg0: i32, %arg1: i32) -> (i32, i32, i32) {
    %c0_i32 = arith.constant 0 : i32
    %c0_i32_0 = arith.constant 0 : i32
    %c0_i32_1 = arith.constant 0 : i32
    return %arg1, %c0_i32, %c0_i32_0 : i32, i32, i32
  }
  func.func @transform_7(%arg0: i32, %arg1: i32) -> (i32, i32, i32) {
    %c0_i32 = arith.constant 0 : i32
    %c0_i32_0 = arith.constant 0 : i32
    %c0_i32_1 = arith.constant 0 : i32
    return %arg1, %c0_i32, %c0_i32_0 : i32, i32, i32
  }
  func.func @transform_8(%arg0: i32, %arg1: i32) -> (i32, i32, i32) {
    %c0_i32 = arith.constant 0 : i32
    %c0_i32_0 = arith.constant 0 : i32
    %c0_i32_1 = arith.constant 0 : i32
    return %arg1, %c0_i32, %c0_i32_0 : i32, i32, i32
  }
  func.func @transform_9(%arg0: i32, %arg1: i32) -> (i32, i32, i32) {
    %c0_i32 = arith.constant 0 : i32
    %c0_i32_0 = arith.constant 0 : i32
    %c0_i32_1 = arith.constant 0 : i32
    return %arg1, %c0_i32, %c0_i32_0 : i32, i32, i32
  }
  func.func @transform_10(%arg0: i32, %arg1: i32) -> (i32, i32, i32) {
    %c0_i32 = arith.constant 0 : i32
    %c0_i32_0 = arith.constant 0 : i32
    %c0_i32_1 = arith.constant 0 : i32
    return %arg1, %c0_i32, %c0_i32_0 : i32, i32, i32
  }
  func.func @transform_11(%arg0: i32, %arg1: i32) -> (i32, i32, i32) {
    %c0_i32 = arith.constant 0 : i32
    %c0_i32_0 = arith.constant 0 : i32
    %c0_i32_1 = arith.constant 0 : i32
    return %arg1, %c0_i32, %c0_i32_0 : i32, i32, i32
  }
  func.func @transform_12(%arg0: i32, %arg1: i32) -> (i32, i32, i32) {
    %c0_i32 = arith.constant 0 : i32
    %c0_i32_0 = arith.constant 0 : i32
    %c0_i32_1 = arith.constant 0 : i32
    return %arg1, %c0_i32, %c0_i32_0 : i32, i32, i32
  }
  func.func @transform_13(%arg0: i32, %arg1: i32) -> (i32, i32, i32) {
    %c0_i32 = arith.constant 0 : i32
    %c0_i32_0 = arith.constant 0 : i32
    %c0_i32_1 = arith.constant 0 : i32
    return %arg1, %c0_i32, %c0_i32_0 : i32, i32, i32
  }
  func.func @transform_14(%arg0: i32, %arg1: i32) -> (i32, i32, i32) {
    %c0_i32 = arith.constant 0 : i32
    %c0_i32_0 = arith.constant 0 : i32
    %c0_i32_1 = arith.constant 0 : i32
    return %arg1, %c0_i32, %c0_i32_0 : i32, i32, i32
  }
  func.func @transform_15(%arg0: i32, %arg1: i32) -> (i32, i32, i32) {
    %c0_i32 = arith.constant 0 : i32
    %c0_i32_0 = arith.constant 0 : i32
    %c0_i32_1 = arith.constant 0 : i32
    return %arg1, %c0_i32, %c0_i32_0 : i32, i32, i32
  }
  func.func @transform_16(%arg0: i32, %arg1: i32) -> (i32, i32, i32) {
    %c0_i32 = arith.constant 0 : i32
    %c0_i32_0 = arith.constant 0 : i32
    %c0_i32_1 = arith.constant 0 : i32
    return %arg1, %c0_i32, %c0_i32_0 : i32, i32, i32
  }
  func.func @transform_17(%arg0: i32, %arg1: i32) -> (i32, i32, i32) {
    %c0_i32 = arith.constant 0 : i32
    %c0_i32_0 = arith.constant 0 : i32
    %c0_i32_1 = arith.constant 0 : i32
    return %arg1, %c0_i32, %c0_i32_0 : i32, i32, i32
  }
  func.func @transform_18(%arg0: i32, %arg1: i32) -> (i32, i32, i32) {
    %c0_i32 = arith.constant 0 : i32
    %c0_i32_0 = arith.constant 0 : i32
    %c0_i32_1 = arith.constant 0 : i32
    return %arg0, %c0_i32, %c0_i32_0 : i32, i32, i32
  }
  func.func @transform_19(%arg0: i32, %arg1: i32) -> (i32, i32, i32) {
    %c0_i32 = arith.constant 0 : i32
    %c0_i32_0 = arith.constant 0 : i32
    %c0_i32_1 = arith.constant 0 : i32
    return %arg0, %c0_i32, %c0_i32_0 : i32, i32, i32
  }
}

</mosaic_0001>

<bundles_post_ra>
// kernel: bert_forward.1
= control target key start
LH: loop header
LB: loop body
LE: loop exit
PB: predicated region body
PF: predicated region fallthrough
CT: control target
= control target key end

     0   :  { %s3553_s0 = inlined_call_operand.vmem [shape: f32[2,8,32], index: 0, kind: input, shape index: {}, may-alias: {0,18}]   ;;  %s3554_s1 = inlined_call_operand.vmem [shape: f32[2,1,8], index: 1, kind: input, shape index: {}]   ;;  %s3555_s2 = inlined_call_operand.vmem [shape: f32[1,32], index: 2, kind: input, shape index: {}]   ;;  %s3556_s3 = inlined_call_operand.vmem [shape: f32[1,32], index: 3, kind: input, shape index: {}]   ;;  %s3557_s4 = inlined_call_operand.vmem [shape: bf16[32,32], index: 4, kind: input, shape index: {}]   ;;  %s3558_s5 = inlined_call_operand.vmem [shape: f32[1,32], index: 5, kind: input, shape index: {}]   ;;  %s3559_s6 = inlined_call_operand.vmem [shape: bf16[2,32,96], index: 6, kind: input, shape index: {}]   ;;  %s3560_s7 = inlined_call_operand.vmem [shape: f32[2,1,96], index: 7, kind: input, shape index: {}]   ;;  %s3561_s8 = inlined_call_operand.vmem [shape: bf16[2,32,32], index: 8, kind: input, shape index: {}]   ;;  %s3562_s9 = inlined_call_operand.vmem [shape: f32[2,1,32], index: 9, kind: input, shape index: {}]   ;;  %s3563_s10 = inlined_call_operand.vmem [shape: f32[2,1,32], index: 10, kind: input, shape index: {}]   ;;  %s3564_s11 = inlined_call_operand.vmem [shape: f32[2,1,32], index: 11, kind: input, shape index: {}]   ;;  %s3565_s12 = inlined_call_operand.vmem [shape: bf16[2,32,64], index: 12, kind: input, shape index: {}]   ;;  %s3566_s13 = inlined_call_operand.vmem [shape: f32[2,1,64], index: 13, kind: input, shape index: {}]   ;;  %s3567_s14 = inlined_call_operand.vmem [shape: bf16[2,64,32], index: 14, kind: input, shape index: {}]   ;;  %s3568_s15 = inlined_call_operand.vmem [shape: f32[2,1,32], index: 15, kind: input, shape index: {}]   ;;  %s3569_s16 = inlined_call_operand.vmem [shape: f32[2,1,32], index: 16, kind: input, shape index: {}]   ;;  %s3570_s17 = inlined_call_operand.vmem [shape: f32[2,1,32], index: 17, kind: input, shape index: {}]   ;;  %s3571_s18 = inlined_call_operand.vmem [shape: f32[2,8,32], index: 18, kind: output, shape index: {0}, may-alias: {0,18}]   ;;  %s3572_s19 = inlined_call_operand.hbm [shape: f32[2,1,32], index: 19, kind: output, shape index: {1}]  }
   0x1   :  { %3588 = sst [smem:[#allocation18_spill]] %s3553_s0 }
   0x2   :  { %3589 = sst [smem:[#allocation19_spill]] %s3554_s1 }
   0x3   :  { %3590 = sst [smem:[#allocation20_spill]] %s3555_s2 }
   0x4   :  { %3591 = sst [smem:[#allocation21_spill]] %s3556_s3 }
   0x5   :  { %3592 = sst [smem:[#allocation22_spill]] %s3557_s4 }
   0x6   :  { %3593 = sst [smem:[#allocation23_spill]] %s3558_s5 }
   0x7   :  { %3594 = sst [smem:[#allocation24_spill]] %s3559_s6 }
   0x8   :  { %3595 = sst [smem:[#allocation25_spill]] %s3561_s8 }
   0x9   :  { %3596 = sst [smem:[#allocation26_spill]] %s3564_s11 }
   0xa   :  { %3597 = sst [smem:[#allocation27_spill]] %s3565_s12 }
   0xb   :  { %3598 = sst [smem:[#allocation28_spill]] %s3566_s13 }
   0xc   :  { %3599 = sst [smem:[#allocation29_spill]] %s3569_s16 }
   0xd   :  { %3600 = sst [smem:[#allocation30_spill]] %s3570_s17 }
   0xe   :  { %3601 = sst [smem:[#allocation31_spill]] %s3571_s18 }
   0xf   :  { %3602 = sst [smem:[#allocation32_spill]] %s3572_s19 }
  0x10   :  { %25 = vsyncpa [#allocation3], 0 }
  0x11   :  { %27 = vsyncpa [#allocation3 + $0x1], 0  ;;  %s3086_s0 = smov 0   ;;  %s3088_s30 = smov 0  }
  0x12   :  { %s3090_s20 = smov 0   ;;  %s3092_s21 = smov 0  }
  0x13   :  { %s3094_s1 = smov 0   ;;  %s3096_s22 = smov 0  }
  0x14   :  { %s3098_s2 = smov 0   ;;  %s3100_s23 = smov 0  }
  0x15 LB: > { %3603 = sst [smem:[#allocation5_spill]] %s2941_s0  ;;  %s2561_s24 = sadd.s32 4294967295, %s2969_s23   ;;  %s2969_s23 = sphi %s3100_s23, %s33_s23   ;;  %s2965_s2 = sphi %s3098_s2, %s3662_s2   ;;  %s2961_s22 = sphi %s3096_s22, %s3661_s22   ;;  %s2957_s1 = sphi %s3094_s1, %s3660_s1   ;;  %s2953_s21 = sphi %s3092_s21, %s3659_s21   ;;  %s2949_s20 = sphi %s3090_s20, %s3658_s20   ;;  %s2945_s30 = sphi %s3088_s30, %s3664_s30   ;;  %s2941_s0 = sphi %s3086_s0, %s3663_s0  }
  0x16   : > { %3604 = sst [smem:[#allocation6_spill]] %s2949_s20  ;;  %s2562_s25 = sadd.s32 4294967294, %s2969_s23  }
  0x17   : > { %3605 = sst [smem:[#allocation7_spill]] %s2953_s21  ;;  %s42_s3 = sadd.s32 1, %s2961_s22 }
  0x18   : > { %3606 = sst [smem:[#allocation8_spill]] %s2957_s1  ;;  %p43_p0 = scmp.ge.s32.totalorder %s42_s3, 2 }
  0x19   : > { %3607 = sst [smem:[#allocation9_spill]] %s2961_s22  ;;  %s45_s26 = sadd.s32 1, %s2965_s2 }
  0x1a   : > { %3608 = sst [smem:[#allocation10_spill]] %s2965_s2  ;;  %p536_p1 = scmp.ne.s32.totalorder %s2949_s20, %s2945_s30 }
  0x1b   : > { %3609 = sst [smem:[#allocation11_spill]] %s2969_s23  ;;  %p537_p2 = scmp.eq.s32.totalorder %s2561_s24, 3 }
  0x1c   : > { %s3666_s3 = smov (%p43_p0, %s42_s3), 0  ;;  %s3668_s26 = smov (!%p43_p0, %s45_s26), %s2965_s2 }
  0x1d   : > { %3610 = sst [smem:[#allocation12_spill]] %s3666_s3  ;;  %p3135_p3 = por %p537_p2, %p536_p1 }
  0x1e   : > { %p542_p4 = scmp.ne.s32.totalorder %s2945_s30, %s2941_s0  ;;  %p47_p5 = scmp.ge.s32.totalorder %s3668_s26, 2 }
  0x1f   : > { %s3611_s27 = scalar_select %p3135_p3, 1, 0 }
  0x20   : > { %p543_p6 = scmp.eq.s32.totalorder %s2562_s25, 3  ;;  %p2565_p7 = scmp.ge.s32.totalorder %s2969_s23, 1 }
  0x21   : > { %3612 = sst [smem:[#allocation13_spill]] %s3611_s27  ;;  %p666_p8 = scmp.lt.s32.totalorder %s2969_s23, 5 }
  0x22   : > { %s3670_s26 = smov (%p47_p5, %s3668_s26), 0  ;;  %p3145_p9 = por %p543_p6, %p542_p4 }
  0x23   : > { %3613 = sst [smem:[#allocation14_spill]] %s3670_s26  ;;  %p667_p10 = pnand %p2565_p7, %p666_p8 }
  0x24   : > { %s3614_s28 = scalar_select %p3145_p9, 1, 0 }
  0x25   : > { %s523_s29 = ssub.s32 %s2965_s2, %s3670_s26  ;;  %s526_s24 = sadd.s32 1, %s2949_s20 }
  0x26   : > { %3615 = sst [smem:[#allocation15_spill]] %s3614_s28  ;;  %p524_p11 = scmp.eq.s32.totalorder %s523_s29, 0 }
  0x27   : > { %670 = sbr.rel (%p667_p10) target bundleno = 3221 (0xc95), region = 92 }
  0x28   : > { %s3153_s3 = scalar_select %p524_p11, %s2949_s20, %s526_s24  }
  0x2a   : > { %3616 = sst [smem:[#allocation16_spill]] %s3153_s3 }
  0x2c   : > { %p771_p12 = scmp.lt.s32.totalorder %s2957_s1, 1  ;;  %p778_p13 = scmp.lt.s32.totalorder %s2953_s21, 1 }
  0x2d   : > { %s3619_s0 = sld [smem:[#allocation18_spill]]  ;;  %s3628_s26 = sand.u32 1, %s2945_s30  }
  0x2e   : > { %s3159_s22 = scalar_select %p771_p12, %s2957_s1, 1 }
  0x2f   : > { %s3162_s28 = scalar_select %p778_p13, %s2953_s21, 1 }
  0x30   : > { %3617 = sst [smem:[#allocation17_spill]] %s3159_s22  ;;  %s2566_s29 = sshll.u32 %s3159_s22, 3 }
  0x31   : > { %s2625_s19 = sshll.u32 %s3162_s28, 4  ;;  %s3620_s6 = sld [smem:[#allocation24_spill]] }
  0x32   : > { %s3621_s8 = sld [smem:[#allocation25_spill]]  ;;  %s3233_s24 = scalar_lea.vmem [#allocation2], %s3628_s26 }
  0x33   : > { %s774_s23 = scalar_lea.vmem %s3619_s0, %s2566_s29  ;;  %s3623_s12 = sld [smem:[#allocation27_spill]] }
  0x34   : > { %s3627_s18 = sld [smem:[#allocation31_spill]] }
  0x35   : > { %s3629_s0 = sld [smem:[#allocation7_spill]] }
  0x37   : > { %s3176_s5 = scalar_lea.vmem %s3620_s6, %s2625_s19  ;;  %s3625_s6 = sld [smem:[#allocation29_spill]] }
  0x38   : > { %s3185_s25 = scalar_lea.vmem %s3621_s8, %s2625_s19  ;;  %s2628_s8 = sshll.u32 %s3162_s28, 5 }
  0x39   : > { %s3202_s21 = scalar_lea.vmem %s3623_s12, %s2625_s19  ;;  %s3216_s2 = scalar_lea.vmem %s3567_s14, %s2628_s8 }
  0x3a   : > { %s3626_s12 = sld [smem:[#allocation30_spill]]  ;;  %s3229_s13 = scalar_lea.vmem %s3627_s18, %s2566_s29 }
  0x3b   : > { %p2576_p0 = scmp.ne.s32.totalorder %s3629_s0, 0 }
  0x3c   : > { %s3631_s29 = sld [smem:[#allocation21_spill]] (!%p2576_p0) }
  0x3d   : > { %s818_s22 = scalar_lea.vmem %s3625_s6, %s3162_s28  ;;  %830 = sbr.rel (%p2576_p0) target bundleno = 376 (0x178), region = 96 }
  0x40   : > { %s821_s11 = scalar_lea.vmem %s3626_s12, %s3162_s28  ;;  %s3630_s12 = sld [smem:[#allocation20_spill]] (!%p2576_p0) }
  0x42   : > { %v831_v0 = vld [vmem:[%s774_s23] sm:$0xff]  ;;  %vm834_vm0 = vcmask 261120  }
  0x43   : > { %v835_v1 = vsel %vm834_vm0, %v831_v0, 0.0  ;;  %v2578_v13 = vld [vmem:[%s3631_s29] ss:$0 sm:$0xff] }
  0x44   : > { %836 = vadd.xlane.f32.xlu0 %v835_v1 }
  0x46   : > { %v2577_v11 = vld [vmem:[%s3630_s12] ss:$0 sm:$0xff] }
  0xcd   : > { %v837_v2 = vpop.xlane.xlu0 %836 }
  0xce   : > { %v839_v3 = vmul.f32 0.03125, %v837_v2 }
  0xd0   : > { %v840_v4 = vsub.f32 %v831_v0, %v839_v3 }
  0xd2   : > { %v841_v5 = vmul.f32 %v840_v4, %v840_v4 }
  0xd4   : > { %v842_v6 = vsel %vm834_vm0, %v841_v5, 0.0 }
  0xd5   : > { %843 = vadd.xlane.f32.xlu0 %v842_v6 }
 0x15e   : > { %v844_v7 = vpop.xlane.xlu0 %843 }
 0x15f   : > { %v845_v8 = vmul.f32 0.03125, %v844_v7 }
 0x161   : > { %v846_v9 = vadd.f32 1e-12, %v845_v8 }
 0x163   : > { %2839 = vrsqrt.f32 %v846_v9 }
 0x170   : > { %v2840_v10 = vpop.eup %2839 }
 0x171   : > { %v848_v12 = vmul.f32 %v2840_v10, %v840_v4 }
 0x173   : > { %v855_v14 = vmul.f32 %v2577_v11, %v848_v12 }
 0x175   : > { %v862_v15 = vadd.f32 %v2578_v13, %v855_v14 }
 0x177   : > { %863 = vst.msk [vmem:[%s3229_s13] sm:$0xff] %vm834_vm0, %v862_v15 }
 0x178 PF: > { %v2841_v16 = vld [vmem:[%s3176_s5 + $0x8] sm:$0xff]   ;;  %v2971_v17 = vmov 0.0   ;;  %v2842_v18 = vld [vmem:[%s3176_s5] sm:$0xff]   ;;  %vm2972_vm1 = vmmov 0   ;;  %vm889_vm2 = vcmask 261120   ;;  %s3632_s20 = scalar_lea.vmem %s3560_s7, %s3162_s28  ;;  %s2973_s3 = smov 104   ;;  %v948_v32 = vlaneseq }
 0x179   : > { %2662 = vmatprep.subr.bf16.mxu0 %v2971_v17  ;;  %2670 = vmatprep.subr.bf16.mxu1 %v2971_v17  ;;  %v2579_v21 = vld [vmem:[%s3632_s20] ss:$0 sm:$0xff]  ;;  %s2974_s1 = smov 120   ;;  %s2975_s27 = smov 96   ;;  %v2977_v30 = vmov 1983009808  }
 0x17a   : > { %2663 = vmatpush3.bf16.msra.mxu0 %v2841_v16  ;;  %2666 = vmatprep.mubr.msk.bf16.mxu0 %vm2972_vm1, %v2971_v17  ;;  %s2976_s19 = smov 112   ;;  %v946_v31 = vunpack.c.l.s4 %v2977_v30  ;;  %v949_v34 = vshrl.u32 %v948_v32, 7  ;;  %v2978_v35 = vmov 1934713408   ;;  %vm1394_vm3 = vcmask 64512   ;;  %s3633_s4 = sld [smem:[#allocation17_spill]] }
 0x17b   : > { %2664 = vmatprep.subr.bf16.mxu0 %v2971_v17  ;;  %2672 = vmatprep.mubr.msk.bf16.mxu1 %vm2972_vm1, %v2971_v17  ;;  %v978_v36 = vunpack.c.l.s4 %v2978_v35  ;;  %s3634_s26 = sld [smem:[#allocation19_spill]]  ;;  %s2979_s8 = smov 64   ;;  %vm1630_vm4 = vcmask 1043456   ;;  %vm1961_vm5 = vcmask 130048   ;;  %vm1963_vm6 = vcmask 195584  }
 0x17c   : > { %v947_v33 = vunpack.c.0.s8 %v946_v31  ;;  %s2981_s12 = smov 8   ;;  %s2982_s18 = smov 24   ;;  %vm2179_vm7 = vcmask 523264  }
 0x17d   : > { %v979_v42 = vunpack.c.0.s8 %v978_v36  ;;  %s3636_s5 = scalar_lea.vmem %s3562_s9, %s3162_s28  ;;  %s3640_s17 = sld [smem:[#allocation28_spill]] }
 0x17e   : > { %v3253_v19 = vld [vmem:[%s3229_s13] sm:$0xff]  ;;  %2665 = vmatpush3.bf16.msra.mxu0 %v2842_v18  ;;  %v3288_v39 = vsub.s32 %v947_v33, %v949_v34  ;;  %s3645_s0 = sld [smem:[#allocation7_spill]] }
 0x17f   : > { %v865_v20 = vpack.c.bf16 %v3253_v19, %v3253_v19  ;;  %2676 = vmatprep.subr.bf16.mxu0 %v2971_v17  ;;  %v3298_v49 = vsub.s32 %v979_v42, %v949_v34 }
 0x181   : > { %2667 = vmatmul.mubr.msk.bf16.vlgmr.msra.gmra.mxu0 %vm889_vm2, %v865_v20  ;;  %s3635_s6 = scalar_lea.vmem %s3634_s26, %s3633_s4 }
 0x182   : > { %2678 = vmatprep.mubr.msk.bf16.mxu0 %vm2972_vm1, %v2971_v17 }
 0x183   : > { %s3641_s26 = scalar_lea.vmem %s3640_s17, %s3162_s28 }
 0x184   : > { %p2618_p1 = scmp.ne.s32.totalorder %s3645_s0, 1 }
 0x241   : > { %v927_v22 = vpop.f32.mrf.mxu0 }
 0x242   : > { %v3269_v23 = vadd.f32 %v2579_v21, %v927_v22 }
 0x243   : > { %v2668_v24 = vpop.f32.mrf.mxu0 }
 0x244   : > { %940 = vrot.lane.b32.xlu1 %v3269_v23, %s2973_s3  ;;  %934 = vrot.lane.b32.xlu0 %v3269_v23, %s2974_s1  ;;  %s3637_s3 = scalar_lea.vmem %s3563_s10, %s3162_s28  ;;  %s3646_s1 = sld [smem:[#allocation22_spill]] (!%p2618_p1) }
 0x245   : > { %v930_v25 = vpop.f32.mrf.mxu0 }
 0x247   : > { %v2669_v26 = vpop.f32.mrf.mxu0 }
 0x248   : > { %1083 = vrot.lane.b32.xlu1 %v3269_v23, %s2975_s27  ;;  %937 = vrot.lane.b32.xlu0 %v3269_v23, %s2976_s19 }
 0x2b6   : > { %v3275_v27 = vpop.permute.xlu0 %934  ;;  %v3278_v28 = vpop.permute.xlu1 %940 }
 0x2b7   : > { %1085 = vrot.lane.b32.xlu0 %v3275_v27, %s2975_s27  ;;  %v959_v40 = vcombine.low %v3275_v27, %v3278_v28  ;;  %v960_v41 = vcombine.high %v3275_v27, %v3278_v28 }
 0x2b9   : > { %v967_v45 = vrot.slane %v959_v40, %v3288_v39  ;;  %v974_v46 = vrot.slane %v960_v41, %v3288_v39 }
 0x2ba   : > { %v3280_v29 = vpop.permute.xlu0 %937  ;;  %v1084_v47 = vpop.permute.xlu1 %1083 }
 0x2bb   : > { %1089 = vrot.lane.b32.xlu0 %v3278_v28, %s2975_s27  ;;  %1087 = vrot.lane.b32.xlu1 %v3280_v29, %s2975_s27  ;;  %v943_v37 = vcombine.low %v3269_v23, %v3280_v29  ;;  %v944_v38 = vcombine.high %v3269_v23, %v3280_v29  ;;  %s3647_s27 = smov (!%p2618_p1), %s3646_s1 }
 0x2bd   : > { %v951_v43 = vrot.slane %v943_v37, %v3288_v39  ;;  %v958_v44 = vrot.slane %v944_v38, %v3288_v39 }
 0x2bf   : > { %v975_v50 = vcombine.low %v951_v43, %v967_v45  ;;  %v976_v51 = vcombine.high %v951_v43, %v967_v45  ;;  %v991_v52 = vcombine.low %v958_v44, %v974_v46  ;;  %v992_v53 = vcombine.high %v958_v44, %v974_v46 }
 0x2c1   : > { %v983_v60 = vrot.slane %v975_v50, %v3298_v49  ;;  %v990_v61 = vrot.slane %v976_v51, %v3298_v49  ;;  %v999_v62 = vrot.slane %v991_v52, %v3298_v49  ;;  %v1006_v63 = vrot.slane %v992_v53, %v3298_v49 }
 0x2c3   : > { %v1011_v8 = vcombine.low %v983_v60, %v990_v61  ;;  %v2583_v9 = vcombine.high %v983_v60, %v990_v61  ;;  %v1027_v10 = vcombine.low %v999_v62, %v1006_v63  ;;  %v2584_v11 = vcombine.high %v999_v62, %v1006_v63 }
 0x2c5   : > { %v1018_v22 = vrot.slane %v1011_v8, %v3288_v39  ;;  %v1026_v24 = vrot.slane %v2583_v9, %v3288_v39  ;;  %v1034_v25 = vrot.slane %v1027_v10, %v3288_v39  ;;  %v1042_v26 = vrot.slane %v2584_v11, %v3288_v39  ;;  %v2589_v8 = vld [vmem:[%s3635_s6] ss:$0 sm:$0xff] }
 0x2c7   : > { %v1043_v41 = vcombine.low %v1018_v22, %v1026_v24  ;;  %v1059_v42 = vcombine.low %v1034_v25, %v1042_v26 }
 0x2c9   : > { %v1051_v50 = vrot.slane %v1043_v41, %v3298_v49  ;;  %v1067_v51 = vrot.slane %v1059_v42, %v3298_v49 }
 0x329   : > { %v1086_v48 = vpop.permute.xlu0 %1085 }
 0x32d   : > { %v1088_v54 = vpop.permute.xlu1 %1087  ;;  %v1090_v55 = vpop.permute.xlu0 %1089 }
 0x32e   : > { %v1095_v56 = vcombine.low %v1084_v47, %v1088_v54  ;;  %v1096_v57 = vcombine.high %v1084_v47, %v1088_v54  ;;  %v1111_v58 = vcombine.low %v1086_v48, %v1090_v55  ;;  %v1112_v59 = vcombine.high %v1086_v48, %v1090_v55 }
 0x330   : > { %v1103_v0 = vrot.slane %v1095_v56, %v3288_v39  ;;  %v1110_v1 = vrot.slane %v1096_v57, %v3288_v39  ;;  %v1119_v2 = vrot.slane %v1111_v58, %v3288_v39  ;;  %v1126_v3 = vrot.slane %v1112_v59, %v3288_v39 }
 0x331   : > { %v1044_v56 = vcombine.high %v1018_v22, %v1026_v24  ;;  %v1060_v57 = vcombine.high %v1034_v25, %v1042_v26  ;;  %v1075_v58 = vcombine.low %v1051_v50, %v1067_v51  ;;  %v1076_v59 = vcombine.high %v1051_v50, %v1067_v51 }
 0x332   : > { %v1127_v4 = vcombine.low %v1103_v0, %v1119_v2  ;;  %v1128_v5 = vcombine.high %v1103_v0, %v1119_v2  ;;  %v1143_v6 = vcombine.low %v1110_v1, %v1126_v3  ;;  %v1144_v7 = vcombine.high %v1110_v1, %v1126_v3 }
 0x333   : > { %v1079_v62 = vpack.c.bf16 %v1075_v58, %v1075_v58  ;;  %v1080_v63 = vpack.c.bf16 %v1076_v59, %v1076_v59  ;;  %v1058_v0 = vrot.slane %v1044_v56, %v3298_v49  ;;  %v1074_v1 = vrot.slane %v1060_v57, %v3298_v49 }
 0x334   : > { %v1135_v12 = vrot.slane %v1127_v4, %v3298_v49  ;;  %v1142_v13 = vrot.slane %v1128_v5, %v3298_v49  ;;  %v1151_v14 = vrot.slane %v1143_v6, %v3298_v49  ;;  %v1158_v15 = vrot.slane %v1144_v7, %v3298_v49 }
 0x335   : > { %v1077_v4 = vcombine.low %v1058_v0, %v1074_v1  ;;  %v1078_v5 = vcombine.high %v1058_v0, %v1074_v1 }
 0x336   : > { %v1163_v16 = vcombine.low %v1135_v12, %v1142_v13  ;;  %v2585_v18 = vcombine.high %v1135_v12, %v1142_v13  ;;  %v1179_v20 = vcombine.low %v1151_v14, %v1158_v15  ;;  %v2586_v21 = vcombine.high %v1151_v14, %v1158_v15 }
 0x337   : > { %v1081_v6 = vpack.c.bf16 %v1077_v4, %v1077_v4  ;;  %v1082_v7 = vpack.c.bf16 %v1078_v5, %v1078_v5 }
 0x338   : > { %v1170_v30 = vrot.slane %v1163_v16, %v3288_v39  ;;  %v1178_v31 = vrot.slane %v2585_v18, %v3288_v39  ;;  %v1186_v32 = vrot.slane %v1179_v20, %v3288_v39  ;;  %v1194_v33 = vrot.slane %v2586_v21, %v3288_v39 }
 0x33a   : > { %v1195_v34 = vcombine.low %v1170_v30, %v1178_v31  ;;  %v1211_v35 = vcombine.low %v1186_v32, %v1194_v33  ;;  %v1196_v36 = vcombine.high %v1170_v30, %v1178_v31  ;;  %v1212_v37 = vcombine.high %v1186_v32, %v1194_v33 }
 0x33c   : > { %v1203_v38 = vrot.slane %v1195_v34, %v3298_v49  ;;  %v1219_v40 = vrot.slane %v1211_v35, %v3298_v49  ;;  %v1210_v45 = vrot.slane %v1196_v36, %v3298_v49  ;;  %v1226_v46 = vrot.slane %v1212_v37, %v3298_v49 }
 0x33e   : > { %v1227_v43 = vcombine.low %v1203_v38, %v1219_v40  ;;  %v1228_v44 = vcombine.high %v1203_v38, %v1219_v40  ;;  %v1229_v54 = vcombine.low %v1210_v45, %v1226_v46  ;;  %v1230_v55 = vcombine.high %v1210_v45, %v1226_v46 }
 0x340   : > { %v1231_v47 = vpack.c.bf16 %v1227_v43, %v1227_v43  ;;  %v1232_v48 = vpack.c.bf16 %v1228_v44, %v1228_v44  ;;  %v1233_v60 = vpack.c.bf16 %v1229_v54, %v1229_v54  ;;  %v1234_v61 = vpack.c.bf16 %v1230_v55, %v1230_v55 }
 0x342   : > { %v1399_v52 = vsel %vm1394_vm3, %v1231_v47, 0  ;;  %v1445_v53 = vsel %vm1394_vm3, %v1232_v48, 0  ;;  %v1491_v2 = vsel %vm1394_vm3, %v1233_v60, 0  ;;  %v1537_v3 = vsel %vm1394_vm3, %v1234_v61, 0 }
 0x343   : > { %2671 = vmatpush3.bf16.xpose.msra.mxu1 %v1399_v52  ;;  %2677 = vmatpush3.bf16.xpose.msra.mxu0 %v1445_v53 }
 0x344   : > { %2682 = vmatprep.subr.bf16.mxu1 %v2971_v17  ;;  %2688 = vmatprep.subr.bf16.mxu0 %v2971_v17 }
 0x34a   : > { %2673 = vmatmul.mubr.msk.bf16.vlgmr.msra.gmra.mxu1 %vm1394_vm3, %v1079_v62  ;;  %2679 = vmatmul.mubr.msk.bf16.vlgmr.msra.gmra.mxu0 %vm1394_vm3, %v1080_v63 }
 0x34b   : > { %2683 = vmatpush3.bf16.xpose.msra.mxu1 %v1491_v2  ;;  %2689 = vmatpush3.bf16.xpose.msra.mxu0 %v1537_v3 }
 0x34c   : > { %2684 = vmatprep.mubr.msk.bf16.mxu1 %vm2972_vm1, %v2971_v17  ;;  %2690 = vmatprep.mubr.msk.bf16.mxu0 %vm2972_vm1, %v2971_v17 }
 0x34d   : > { %2694 = vmatprep.subr.bf16.mxu1 %v2971_v17  ;;  %2700 = vmatprep.subr.bf16.mxu0 %v2971_v17 }
 0x352   : > { %2685 = vmatmul.mubr.msk.bf16.vlgmr.msra.gmra.mxu1 %vm1394_vm3, %v1081_v6  ;;  %2691 = vmatmul.mubr.msk.bf16.vlgmr.msra.gmra.mxu0 %vm1394_vm3, %v1082_v7 }
 0x353   : > { %2696 = vmatprep.mubr.msk.bf16.mxu1 %vm2972_vm1, %v2971_v17  ;;  %2702 = vmatprep.mubr.msk.bf16.mxu0 %vm2972_vm1, %v2971_v17 }
 0x40a   : > { %v1435_v9 = vpop.f32.mrf.mxu1  ;;  %v1481_v10 = vpop.f32.mrf.mxu0 }
 0x40b   : > { %v1436_v11 = vadd.f32 %v2589_v8, %v1435_v9  ;;  %v1482_v12 = vadd.f32 %v2589_v8, %v1481_v10 }
 0x40c   : > { %v2674_v13 = vpop.f32.mrf.mxu1  ;;  %v2680_v14 = vpop.f32.mrf.mxu0 }
 0x40d   : > { %v1579_v15 = vsel %vm1394_vm3, %v1436_v11, -inf  ;;  %v1582_v16 = vsel %vm1394_vm3, %v1482_v12, -inf }
 0x40e   : > { %1580 = vmax.xlane.f32.xlu1 %v1579_v15  ;;  %v1438_v18 = vpop.f32.mrf.mxu1  ;;  %1583 = vmax.xlane.f32.xlu0 %v1582_v16  ;;  %v1484_v20 = vpop.f32.mrf.mxu0 }
 0x410   : > { %v2675_v21 = vpop.f32.mrf.mxu1  ;;  %v2681_v22 = vpop.f32.mrf.mxu0 }
 0x412   : > { %v1527_v24 = vpop.f32.mrf.mxu1  ;;  %v1573_v25 = vpop.f32.mrf.mxu0 }
 0x413   : > { %v1528_v26 = vadd.f32 %v2589_v8, %v1527_v24  ;;  %v1574_v30 = vadd.f32 %v2589_v8, %v1573_v25 }
 0x414   : > { %v2686_v31 = vpop.f32.mrf.mxu1  ;;  %v2692_v32 = vpop.f32.mrf.mxu0 }
 0x415   : > { %v1585_v33 = vsel %vm1394_vm3, %v1528_v26, -inf  ;;  %v1588_v34 = vsel %vm1394_vm3, %v1574_v30, -inf }
 0x416   : > { %v1530_v35 = vpop.f32.mrf.mxu1  ;;  %1586 = vmax.xlane.f32.xlu0 %v1585_v33  ;;  %1589 = vmax.xlane.f32.xlu1 %v1588_v34  ;;  %v1576_v36 = vpop.f32.mrf.mxu0 }
 0x418   : > { %v2687_v37 = vpop.f32.mrf.mxu1  ;;  %v2693_v38 = vpop.f32.mrf.mxu0 }
 0x427   : > { %1237 = vrot.lane.b32.xlu1 %v3275_v27, %s2979_s8 }
 0x42c   : > { %1235 = vrot.lane.b32.xlu0 %v3269_v23, %s2979_s8 }
 0x497   : > { %v1581_v40 = vpop.xlane.xlu1 %1580  ;;  %v1584_v41 = vpop.xlane.xlu0 %1583 }
 0x498   : > { %v1591_v42 = vsub.f32 %v1436_v11, %v1581_v40  ;;  %v1592_v43 = vsub.f32 %v1482_v12, %v1584_v41 }
 0x49a   : > { %v1595_v44 = vmul.f32 1.442695, %v1591_v42  ;;  %v1597_v45 = vmul.f32 1.442695, %v1592_v43 }
 0x49c   : > { %2851 = vpow2.f32 %v1595_v44 }
 0x49d   : > { %2853 = vpow2.f32 %v1597_v45 }
 0x49f   : > { %v1590_v23 = vpop.xlane.xlu1 %1589  ;;  %v1587_v50 = vpop.xlane.xlu0 %1586 }
 0x4a0   : > { %v1594_v51 = vsub.f32 %v1574_v30, %v1590_v23  ;;  %v1593_v52 = vsub.f32 %v1528_v26, %v1587_v50 }
 0x4a2   : > { %v1601_v53 = vmul.f32 1.442695, %v1594_v51  ;;  %v1599_v54 = vmul.f32 1.442695, %v1593_v52 }
 0x4a3   : > { %v1238_v58 = vpop.permute.xlu1 %1237 }
 0x4a4   : > { %2855 = vpow2.f32 %v1601_v53 }
 0x4a5   : > { %2857 = vpow2.f32 %v1599_v54 }
 0x4a9   : > { %v3359_v46 = vpop.eup %2851 }
 0x4aa   : > { %v3361_v47 = vpop.eup %2853  ;;  %v1603_v48 = vsel %vm1394_vm3, %v3359_v46, 0.0 }
 0x4ab   : > { %1604 = vadd.xlane.f32.xlu0 %v1603_v48  ;;  %v1606_v27 = vsel %vm1394_vm3, %v3361_v47, 0.0 }
 0x4ac   : > { %1607 = vadd.xlane.f32.xlu1 %v1606_v27 }
 0x4b1   : > { %v3369_v55 = vpop.eup %2855 }
 0x4b2   : > { %v3371_v56 = vpop.eup %2857  ;;  %v1612_v57 = vsel %vm1394_vm3, %v3369_v55, 0.0 }
 0x4bd   : > { %1239 = vrot.lane.b32.xlu1 %v3280_v29, %s2979_s8  ;;  %v1609_v29 = vsel %vm1394_vm3, %v3371_v56, 0.0 }
 0x4c1   : > { %1241 = vrot.lane.b32.xlu0 %v3278_v28, %s2979_s8  ;;  %v1236_v28 = vpop.permute.xlu0 %1235  ;;  %s3642_s8 = scalar_lea.vmem %s3568_s15, %s3162_s28 }
 0x4e0   : > { %1613 = vadd.xlane.f32.xlu0 %v1612_v57 }
 0x4e1   : > { %1610 = vadd.xlane.f32.xlu1 %v1609_v29 }
 0x534   : > { %v1605_v59 = vpop.xlane.xlu0 %1604 }
 0x535   : > { %v1608_v60 = vpop.xlane.xlu1 %1607  ;;  %2859 = vrcp.f32 %v1605_v59 }
 0x536   : > { %2861 = vrcp.f32 %v1608_v60 }
 0x538   : > { %v1242_v61 = vpop.permute.xlu0 %1241 }
 0x539   : > { %v1263_v62 = vcombine.low %v1238_v58, %v1242_v61  ;;  %v1264_v63 = vcombine.high %v1238_v58, %v1242_v61  ;;  %v1240_v0 = vpop.permute.xlu1 %1239 }
 0x53a   : > { %v1247_v1 = vcombine.low %v1236_v28, %v1240_v0  ;;  %v1248_v2 = vcombine.high %v1236_v28, %v1240_v0 }
 0x53b   : > { %v1271_v3 = vrot.slane %v1263_v62, %v3288_v39  ;;  %v1278_v4 = vrot.slane %v1264_v63, %v3288_v39 }
 0x53c   : > { %v1255_v5 = vrot.slane %v1247_v1, %v3288_v39  ;;  %v1262_v6 = vrot.slane %v1248_v2, %v3288_v39 }
 0x53e   : > { %v1279_v7 = vcombine.low %v1255_v5, %v1271_v3  ;;  %v1280_v8 = vcombine.high %v1255_v5, %v1271_v3  ;;  %v1295_v9 = vcombine.low %v1262_v6, %v1278_v4  ;;  %v1296_v10 = vcombine.high %v1262_v6, %v1278_v4 }
 0x540   : > { %v1287_v11 = vrot.slane %v1279_v7, %v3298_v49  ;;  %v1294_v12 = vrot.slane %v1280_v8, %v3298_v49  ;;  %v1303_v13 = vrot.slane %v1295_v9, %v3298_v49  ;;  %v1310_v14 = vrot.slane %v1296_v10, %v3298_v49 }
 0x542   : > { %v1315_v15 = vcombine.low %v1287_v11, %v1294_v12  ;;  %v2587_v16 = vcombine.high %v1287_v11, %v1294_v12  ;;  %v1331_v18 = vcombine.low %v1303_v13, %v1310_v14  ;;  %v2588_v20 = vcombine.high %v1303_v13, %v1310_v14  ;;  %v2860_v33 = vpop.eup %2859 }
 0x543   : > { %v2862_v38 = vpop.eup %2861  ;;  %v1619_v48 = vmul.f32 %v2860_v33, %v3359_v46 }
 0x544   : > { %v1322_v21 = vrot.slane %v1315_v15, %v3288_v39  ;;  %v1330_v22 = vrot.slane %v2587_v16, %v3288_v39  ;;  %v1338_v24 = vrot.slane %v1331_v18, %v3288_v39  ;;  %v1346_v25 = vrot.slane %v2588_v20, %v3288_v39 }
 0x545   : > { %v1620_v27 = vmul.f32 %v2862_v38, %v3361_v47  ;;  %v1623_v53 = vpack.c.bf16 %v1619_v48, %v1619_v48 }
 0x546   : > { %v1347_v26 = vcombine.low %v1322_v21, %v1330_v22  ;;  %v1363_v30 = vcombine.low %v1338_v24, %v1346_v25  ;;  %v1348_v31 = vcombine.high %v1322_v21, %v1330_v22  ;;  %v1364_v32 = vcombine.high %v1338_v24, %v1346_v25 }
 0x547   : > { %v1624_v54 = vpack.c.bf16 %v1620_v27, %v1620_v27 }
 0x548   : > { %v1355_v34 = vrot.slane %v1347_v26, %v3298_v49  ;;  %v1371_v35 = vrot.slane %v1363_v30, %v3298_v49  ;;  %v1362_v36 = vrot.slane %v1348_v31, %v3298_v49  ;;  %v1378_v37 = vrot.slane %v1364_v32, %v3298_v49  ;;  %v2843_v30 = vld [vmem:[%s3185_s25 + $0x8] sm:$0xff]  }
 0x54a   : > { %v1379_v40 = vcombine.low %v1355_v34, %v1371_v35  ;;  %v1380_v41 = vcombine.high %v1355_v34, %v1371_v35  ;;  %v1381_v42 = vcombine.low %v1362_v36, %v1378_v37  ;;  %v1382_v43 = vcombine.high %v1362_v36, %v1378_v37 }
 0x54c   : > { %v1383_v44 = vpack.c.bf16 %v1379_v40, %v1379_v40  ;;  %v1384_v45 = vpack.c.bf16 %v1380_v41, %v1380_v41  ;;  %v1385_v51 = vpack.c.bf16 %v1381_v42, %v1381_v42  ;;  %v1386_v52 = vpack.c.bf16 %v1382_v43, %v1382_v43  ;;  %v2844_v41 = vld [vmem:[%s3185_s25] sm:$0xff]   ;;  %s2980_s25 = smov 16  }
 0x54e   : > { %v1632_v23 = vsel %vm1630_vm4, %v1383_v44, 0  ;;  %v1678_v50 = vsel %vm1630_vm4, %v1384_v45, 0  ;;  %v1724_v46 = vsel %vm1630_vm4, %v1385_v51, 0  ;;  %v1770_v47 = vsel %vm1630_vm4, %v1386_v52, 0 }
 0x54f   : > { %2695 = vmatpush3.bf16.msra.mxu1 %v1632_v23  ;;  %2701 = vmatpush3.bf16.msra.mxu0 %v1678_v50 }
 0x550   : > { %2706 = vmatprep.subr.bf16.mxu1 %v2971_v17  ;;  %2712 = vmatprep.subr.bf16.mxu0 %v2971_v17 }
 0x552   : > { %2697 = vmatmul.mubr.msk.bf16.vlgmr.msra.gmra.mxu1 %vm1394_vm3, %v1623_v53  ;;  %2703 = vmatmul.mubr.msk.bf16.vlgmr.msra.gmra.mxu0 %vm1394_vm3, %v1624_v54 }
 0x553   : > { %2707 = vmatpush3.bf16.msra.mxu1 %v1724_v46  ;;  %2713 = vmatpush3.bf16.msra.mxu0 %v1770_v47 }
 0x554   : > { %2708 = vmatprep.mubr.msk.bf16.mxu1 %vm2972_vm1, %v2971_v17  ;;  %2714 = vmatprep.mubr.msk.bf16.mxu0 %vm2972_vm1, %v2971_v17 }
 0x555   : > { %2718 = vmatprep.subr.bf16.mxu1 %v2971_v17  ;;  %2726 = vmatprep.subr.bf16.mxu0 %v2971_v17 }
 0x569   : > { %v1614_v57 = vpop.xlane.xlu0 %1613 }
 0x56a   : > { %2863 = vrcp.f32 %v1614_v57  ;;  %v1611_v29 = vpop.xlane.xlu1 %1610 }
 0x56b   : > { %2865 = vrcp.f32 %v1611_v29 }
 0x577   : > { %v2864_v28 = vpop.eup %2863 }
 0x578   : > { %v2866_v58 = vpop.eup %2865  ;;  %v1622_v59 = vmul.f32 %v2864_v28, %v3369_v55 }
 0x579   : > { %v1621_v60 = vmul.f32 %v2866_v58, %v3371_v56 }
 0x57a   : > { %v1626_v61 = vpack.c.bf16 %v1622_v59, %v1622_v59 }
 0x57b   : > { %v1625_v62 = vpack.c.bf16 %v1621_v60, %v1621_v60 }
 0x57c   : > { %2715 = vmatmul.mubr.msk.bf16.vlgmr.msra.gmra.mxu0 %vm1394_vm3, %v1626_v61 }
 0x57d   : > { %2709 = vmatmul.mubr.msk.bf16.vlgmr.msra.gmra.mxu1 %vm1394_vm3, %v1625_v62  ;;  %2730 = vmatprep.mubr.msk.bf16.mxu0 %vm2972_vm1, %v2971_v17  ;;  %v2600_v62 = vld [vmem:[%s3636_s5] ss:$0 sm:$0xff] }
 0x57e   : > { %2722 = vmatprep.mubr.msk.bf16.mxu1 %vm2972_vm1, %v2971_v17  ;;  %2719 = vmatpush3.bf16.msra.mxu1 %v2843_v30  ;;  %v2606_v30 = vld [vmem:[%s3641_s26] ss:$0 sm:$0xff] }
 0x57f   : > { %2720 = vmatprep.subr.bf16.mxu1 %v2971_v17 }
 0x582   : > { %2721 = vmatpush3.bf16.msra.mxu1 %v2844_v41 }
 0x583   : > { %2734 = vmatprep.subr.bf16.mxu1 %v2971_v17 }
 0x612   : > { %v1668_v63 = vpop.f32.mrf.mxu1  ;;  %v1714_v0 = vpop.f32.mrf.mxu0 }
 0x614   : > { %v2698_v1 = vpop.f32.mrf.mxu1  ;;  %v2704_v2 = vpop.f32.mrf.mxu0 }
 0x616   : > { %v1671_v3 = vpop.f32.mrf.mxu1  ;;  %v1717_v55 = vpop.f32.mrf.mxu0 }
 0x618   : > { %v2699_v4 = vpop.f32.mrf.mxu1  ;;  %v2705_v56 = vpop.f32.mrf.mxu0 }
 0x63c   : > { %v1806_v5 = vpop.f32.mrf.mxu0 }
 0x63d   : > { %v1760_v6 = vpop.f32.mrf.mxu1  ;;  %v1828_v7 = vcombine.low %v1714_v0, %v1806_v5  ;;  %v1829_v8 = vcombine.high %v1714_v0, %v1806_v5 }
 0x63e   : > { %v1812_v9 = vcombine.low %v1668_v63, %v1760_v6  ;;  %v1813_v10 = vcombine.high %v1668_v63, %v1760_v6  ;;  %v2716_v11 = vpop.f32.mrf.mxu0 }
 0x63f   : > { %v1836_v12 = vrot.slane %v1828_v7, %v3288_v39  ;;  %v1843_v13 = vrot.slane %v1829_v8, %v3288_v39  ;;  %v2710_v14 = vpop.f32.mrf.mxu1 }
 0x640   : > { %v1820_v15 = vrot.slane %v1812_v9, %v3288_v39  ;;  %v1827_v16 = vrot.slane %v1813_v10, %v3288_v39  ;;  %v1809_v18 = vpop.f32.mrf.mxu0  ;;  %v2845_v9 = vld [vmem:[%s3202_s21 + $0x8] sm:$0xff]   ;;  %v2846_v10 = vld [vmem:[%s3202_s21] sm:$0xff]   ;;  %s3638_s21 = sld [smem:[#allocation26_spill]] }
 0x641   : > { %v1763_v20 = vpop.f32.mrf.mxu1  ;;  %2727 = vmatpush3.bf16.msra.mxu0 %v2845_v9  ;;  %v2604_v14 = vld [vmem:[%s3637_s3] ss:$0 sm:$0xff] }
 0x642   : > { %v1844_v21 = vcombine.low %v1820_v15, %v1836_v12  ;;  %v1845_v22 = vcombine.high %v1820_v15, %v1836_v12  ;;  %v1860_v24 = vcombine.low %v1827_v16, %v1843_v13  ;;  %v1861_v25 = vcombine.high %v1827_v16, %v1843_v13  ;;  %v2717_v26 = vpop.f32.mrf.mxu0  ;;  %2728 = vmatprep.subr.bf16.mxu0 %v2971_v17 }
 0x643   : > { %v2711_v31 = vpop.f32.mrf.mxu1  ;;  %v2850_v26 = vld [vmem:[%s3216_s2] sm:$0xff]  }
 0x644   : > { %v1852_v32 = vrot.slane %v1844_v21, %v3298_v49  ;;  %v1859_v33 = vrot.slane %v1845_v22, %v3298_v49  ;;  %v1868_v34 = vrot.slane %v1860_v24, %v3298_v49  ;;  %v1875_v35 = vrot.slane %v1861_v25, %v3298_v49  ;;  %v2847_v22 = vld [vmem:[%s3216_s2 + $0x18] sm:$0xff]   ;;  %v2848_v24 = vld [vmem:[%s3216_s2 + $0x10] sm:$0xff]   ;;  %v2849_v25 = vld [vmem:[%s3216_s2 + $0x8] sm:$0xff]  }
 0x645   : > { %2729 = vmatpush3.bf16.msra.mxu0 %v2846_v10 }
 0x646   : > { %v1880_v36 = vcombine.low %v1852_v32, %v1859_v33  ;;  %v2598_v37 = vcombine.high %v1852_v32, %v1859_v33  ;;  %v1896_v38 = vcombine.low %v1868_v34, %v1875_v35  ;;  %v2599_v40 = vcombine.high %v1868_v34, %v1875_v35  ;;  %s3639_s19 = scalar_lea.vmem %s3638_s21, %s3162_s28  ;;  %s3648_s28 = sld [smem:[#allocation23_spill]] (!%p2618_p1) }
 0x647   : > { %v2605_v16 = vld [vmem:[%s3639_s19] ss:$0 sm:$0xff] }
 0x648   : > { %v1887_v42 = vrot.slane %v1880_v36, %v3288_v39  ;;  %v1895_v43 = vrot.slane %v2598_v37, %v3288_v39  ;;  %v1903_v44 = vrot.slane %v1896_v38, %v3288_v39  ;;  %v1911_v45 = vrot.slane %v2599_v40, %v3288_v39 }
 0x64a   : > { %v1913_v48 = vcombine.high %v1887_v42, %v1895_v43  ;;  %v1929_v27 = vcombine.high %v1903_v44, %v1911_v45  ;;  %v1912_v23 = vcombine.low %v1887_v42, %v1895_v43  ;;  %v1928_v50 = vcombine.low %v1903_v44, %v1911_v45 }
 0x64c   : > { %v1927_v51 = vrot.slane %v1913_v48, %v3298_v49  ;;  %v1943_v52 = vrot.slane %v1929_v27, %v3298_v49  ;;  %v1920_v53 = vrot.slane %v1912_v23, %v3298_v49  ;;  %v1936_v54 = vrot.slane %v1928_v50, %v3298_v49  ;;  %v2610_v48 = vld [vmem:[%s3642_s8] ss:$0 sm:$0xff] }
 0x64e   : > { %v1946_v46 = vcombine.low %v1927_v51, %v1943_v52  ;;  %v1945_v47 = vcombine.high %v1920_v53, %v1936_v54  ;;  %v1944_v57 = vcombine.low %v1920_v53, %v1936_v54  ;;  %v1947_v39 = vcombine.high %v1927_v51, %v1943_v52 }
 0x650   : > { %1953 = vrot.lane.b32.xlu1 %v1946_v46, %s2980_s25  ;;  %1949 = vrot.lane.b32.xlu0 %v1945_v47, %s2981_s12 }
 0x654   : > { %1957 = vrot.lane.b32.xlu1 %v1947_v39, %s2982_s18 }
 0x6c2   : > { %v1954_v29 = vpop.permute.xlu1 %1953  ;;  %v1950_v28 = vpop.permute.xlu0 %1949 }
 0x6c3   : > { %v1960_v58 = vsel %vm1394_vm3, %v1944_v57, %v1950_v28 }
 0x6c4   : > { %v1962_v60 = vsel %vm1961_vm5, %v1960_v58, %v1954_v29 }
 0x6c6   : > { %v1958_v59 = vpop.permute.xlu1 %1957 }
 0x6c7   : > { %v1964_v49 = vsel %vm1963_vm6, %v1962_v60, %v1958_v59 }
 0x6c8   : > { %v1965_v61 = vpack.c.bf16 %v1964_v49, %v1964_v49  ;;  %v2616_v49 = vld [vmem:[%s818_s22] ss:$0 sm:$0xff] }
 0x6ca   : > { %2723 = vmatmul.mubr.msk.bf16.vlgmr.msra.gmra.mxu1 %vm889_vm2, %v1965_v61 }
 0x6cb   : > { %2742 = vmatprep.mubr.msk.bf16.mxu1 %vm2972_vm1, %v2971_v17  ;;  %2735 = vmatpush3.bf16.msra.mxu1 %v2847_v22 }
 0x6cc   : > { %2736 = vmatprep.subr.bf16.mxu1 %v2971_v17 }
 0x6cf   : > { %2737 = vmatpush3.bf16.msra.mxu1 %v2848_v24 }
 0x6d0   : > { %2738 = vmatprep.subr.bf16.mxu1 %v2971_v17 }
 0x6d3   : > { %2739 = vmatpush3.bf16.msra.mxu1 %v2849_v25 }
 0x6d4   : > { %2740 = vmatprep.subr.bf16.mxu1 %v2971_v17 }
 0x6d7   : > { %2741 = vmatpush3.bf16.msra.mxu1 %v2850_v26 }
 0x78a   : > { %v2026_v63 = vpop.f32.mrf.mxu1 }
 0x78b   : > { %v2027_v0 = vadd.f32 %v2600_v62, %v2026_v63  ;;  %v2617_v62 = vld [vmem:[%s821_s11] ss:$0 sm:$0xff] }
 0x78c   : > { %v2724_v1 = vpop.f32.mrf.mxu1 }
 0x78d   : > { %v2032_v2 = vadd.f32 %v2027_v0, %v3253_v19 }
 0x78e   : > { %v2029_v3 = vpop.f32.mrf.mxu1 }
 0x78f   : > { %v2035_v55 = vsel %vm889_vm2, %v2032_v2, 0.0 }
 0x790   : > { %2036 = vadd.xlane.f32.xlu0 %v2035_v55  ;;  %v2725_v4 = vpop.f32.mrf.mxu1 }
 0x819   : > { %v2037_v56 = vpop.xlane.xlu0 %2036 }
 0x81a   : > { %v2039_v5 = vmul.f32 0.03125, %v2037_v56 }
 0x81c   : > { %v2040_v6 = vsub.f32 %v2032_v2, %v2039_v5 }
 0x81e   : > { %v2041_v7 = vmul.f32 %v2040_v6, %v2040_v6 }
 0x820   : > { %v2042_v8 = vsel %vm889_vm2, %v2041_v7, 0.0 }
 0x821   : > { %2043 = vadd.xlane.f32.xlu1 %v2042_v8 }
 0x8aa   : > { %v2044_v19 = vpop.xlane.xlu1 %2043 }
 0x8ab   : > { %v2045_v11 = vmul.f32 0.03125, %v2044_v19 }
 0x8ad   : > { %v2046_v12 = vadd.f32 1e-12, %v2045_v11 }
 0x8af   : > { %2867 = vrsqrt.f32 %v2046_v12 }
 0x8bc   : > { %v2868_v13 = vpop.eup %2867 }
 0x8bd   : > { %v2048_v15 = vmul.f32 %v2868_v13, %v2040_v6 }
 0x8bf   : > { %v2055_v18 = vmul.f32 %v2604_v14, %v2048_v15 }
 0x8c1   : > { %v2062_v20 = vadd.f32 %v2605_v16, %v2055_v18 }
 0x8c3   : > { %v2063_v21 = vpack.c.bf16 %v2062_v20, %v2062_v20 }
 0x8c5   : > { %2731 = vmatmul.mubr.msk.bf16.vlgmr.msra.gmra.mxu0 %vm889_vm2, %v2063_v21 }
 0x985   : > { %v2124_v31 = vpop.f32.mrf.mxu0 }
 0x986   : > { %v2125_v32 = vadd.f32 %v2606_v30, %v2124_v31 }
 0x987   : > { %v2732_v33 = vpop.f32.mrf.mxu0 }
 0x988   : > { %v2131_v34 = vmul.f32 0.044715, %v2125_v32  ;;  %v2130_v17 = vmul.f32 0.5, %v2125_v32 }
 0x989   : > { %v2127_v35 = vpop.f32.mrf.mxu0 }
 0x98a   : > { %v2132_v36 = vmul.f32 %v2131_v34, %v2125_v32 }
 0x98b   : > { %v2733_v37 = vpop.f32.mrf.mxu0 }
 0x98c   : > { %v2133_v38 = vmul.f32 %v2132_v36, %v2125_v32 }
 0x98e   : > { %v2134_v40 = vadd.f32 %v2133_v38, %v2125_v32 }
 0x990   : > { %v2135_v41 = vmul.f32 0.7978846, %v2134_v40 }
 0x992   : > { %2869 = vtanh.f32 %v2135_v41 }
 0x99f   : > { %v2870_v42 = vpop.eup %2869 }
 0x9a0   : > { %v2137_v43 = vadd.f32 1.0, %v2870_v42 }
 0x9a2   : > { %v2138_v44 = vmul.f32 %v2137_v43, %v2130_v17 }
 0x9a4   : > { %v2139_v45 = vpack.c.bf16 %v2138_v44, %v2138_v44 }
 0x9a6   : > { %2743 = vmatmul.mubr.msk.bf16.vlgmr.msra.gmra.mxu1 %vm2179_vm7, %v2139_v45 }
 0xa66   : > { %v2217_v27 = vpop.f32.mrf.mxu1 }
 0xa67   : > { %v2218_v23 = vadd.f32 %v2610_v48, %v2217_v27 }
 0xa68   : > { %v2744_v50 = vpop.f32.mrf.mxu1 }
 0xa69   : > { %v2223_v51 = vadd.f32 %v2218_v23, %v2062_v20 }
 0xa6a   : > { %v2220_v52 = vpop.f32.mrf.mxu1 }
 0xa6b   : > { %v2226_v53 = vsel %vm889_vm2, %v2223_v51, 0.0 }
 0xa6c   : > { %2227 = vadd.xlane.f32.xlu0 %v2226_v53  ;;  %v2745_v54 = vpop.f32.mrf.mxu1 }
 0xaf5   : > { %v2228_v46 = vpop.xlane.xlu0 %2227 }
 0xaf6   : > { %v2229_v47 = vmul.f32 0.03125, %v2228_v46 }
 0xaf8   : > { %v2230_v57 = vsub.f32 %v2223_v51, %v2229_v47 }
 0xafa   : > { %v2231_v39 = vmul.f32 %v2230_v57, %v2230_v57 }
 0xafc   : > { %v2232_v29 = vsel %vm889_vm2, %v2231_v39, 0.0 }
 0xafd   : > { %2233 = vadd.xlane.f32.xlu0 %v2232_v29 }
 0xb86   : > { %v2234_v28 = vpop.xlane.xlu0 %2233 }
 0xb87   : > { %v2235_v58 = vmul.f32 0.03125, %v2234_v28 }
 0xb89   : > { %v2236_v59 = vadd.f32 1e-12, %v2235_v58 }
 0xb8b   : > { %2871 = vrsqrt.f32 %v2236_v59 }
 0xb98   : > { %v2872_v60 = vpop.eup %2871 }
 0xb99   : > { %v2238_v61 = vmul.f32 %v2872_v60, %v2230_v57 }
 0xb9b   : > { %v2245_v63 = vmul.f32 %v2616_v49, %v2238_v61  ;;  %2257 = sbr.rel (%p2618_p1) target bundleno = 3195 (0xc7b), region = 100 }
 0xb9d   : > { %v2252_v0 = vadd.f32 %v2617_v62, %v2245_v63 }
 0xb9f   : > { %2253 = vst.msk [vmem:[%s3229_s13] sm:$0xff] %vm889_vm2, %v2252_v0 }
 0xba0   : > { %v2873_v1 = vld [vmem:[%s3646_s1 + $0x8] sm:$0xff]   ;;  %v2983_v2 = vmov 0.0   ;;  %v2874_v3 = vld [vmem:[%s3647_s27] sm:$0xff]   ;;  %vm2984_vm8 = vmmov 0   ;;  %v2258_v55 = vpack.c.bf16 %v2252_v0, %v2252_v0  ;;  %vm2320_vm9 = vcmask 253952  }
 0xba1   : > { %2746 = vmatprep.subr.bf16.mxu0 %v2983_v2  ;;  %2750 = vmatprep.mubr.msk.bf16.mxu0 %vm2984_vm8, %v2983_v2  ;;  %v2263_v4 = vld [vmem:[%s3648_s28] sm:$0x1] }
 0xba2   : > { %2747 = vmatpush3.bf16.msra.mxu0 %v2873_v1 }
 0xba3   : > { %2748 = vmatprep.subr.bf16.mxu0 %v2983_v2 }
 0xba6   : > { %2749 = vmatpush3.bf16.msra.mxu0 %v2874_v3 }
 0xba9   : > { %2751 = vmatmul.mubr.msk.bf16.vlgmr.msra.gmra.mxu0 %vm889_vm2, %v2258_v55 }
 0xc69   : > { %v2313_v56 = vpop.f32.mrf.mxu0 }
 0xc6a   : > { %v2314_v5 = vadd.f32 %v2313_v56, %v2263_v4 }
 0xc6b   : > { %v2752_v6 = vpop.f32.mrf.mxu0 }
 0xc6c   : > { %2875 = vtanh.f32 %v2314_v5 }
 0xc6d   : > { %v2316_v7 = vpop.f32.mrf.mxu0 }
 0xc6f   : > { %v2753_v8 = vpop.f32.mrf.mxu0 }
 0xc79   : > { %v2876_v9 = vpop.eup %2875 }
 0xc7a   : > { %2321 = vst.msk [vmem:[%s3233_s24] sm:$0x1] %vm2320_vm9, %v2876_v9 }
 0xc7b PF: > { %s3649_s19 = sld [smem:[#allocation8_spill]]  ;;  %s2342_s25 = sshll.u32 %s3233_s24, 4  ;;  %s2343_s25 = int_to_ptr.vmem [resolvable:$true] %s2342_s25 }
 0xc7c   : > { %s3651_s2 = sld [smem:[#allocation32_spill]]  ;;  %s3653_s12 = sand.u32 1, %s2945_s30  }
 0xc7d   : > { %s2327_s18 = scalar_lea.sflag [#allocation3], %s3653_s12  ;;  %s2877_s23 = scalar_lea.vmem %s2343_s25, 16 }
 0xc7e   : > { %p2878_p2 = scmp.ne.s32.totalorder %s2343_s25, %s2877_s23  ;;  %s2985_s29 = smov [#allocation2]  }
 0xc7f   : > { %s2881_s5 = sshll.u32 %s2985_s29, 4  ;;  %s2882_s5 = int_to_ptr.vmem [resolvable:$false] %s2881_s5 }
 0xc80   : > { %p2879_p4 = pnand %p2878_p2, %p3135_p3  ;;  %s2883_s0 = scalar_lea.vmem %s2882_s5, 32 }
 0xc81   : > { %s2622_s16 = sshll.u32 %s3649_s19, 4  ;;  %p2884_p6 = scmp.lt.s32.totalorder %s2343_s25, %s2882_s5 }
 0xc82   : > { %s3652_s6 = smov %s3651_s2  ;;  %s2340_s8 = scalar_lea.hbm %s3651_s2, %s2622_s16 }
 0xc83   : > { %p2880_p5 = pneg %p2879_p4  ;;  %p2885_p7 = scmp.lt.s32.totalorder %s2883_s0, %s2877_s23 }
 0xc85   : > { %p2886_p8 = por %p2885_p7, %p2884_p6 }
 0xc87   : > { %p2887_p10 = pnand %p2886_p8, %p2880_p5 }
 0xc89   : > { %2890 = shalt.err (!%p2887_p10)
}
 0xc8a   : > { %s2891_s20 = scalar_lea.hbm %s2340_s8, 16  ;;  %s2895_s1 = scalar_lea.hbm %s3652_s6, 32 }
 0xc8b   : > { %p2892_p11 = scmp.ne.s32.totalorder %s2340_s8, %s2891_s20  ;;  %p2896_p0 = scmp.lt.s32.totalorder %s2340_s8, %s3652_s6 }
 0xc8c   : > { %p2897_p1 = scmp.lt.s32.totalorder %s2895_s1, %s2891_s20 }
 0xc8d   : > { %p2893_p12 = pnand %p2892_p11, %p3135_p3 }
 0xc8e   : > { %p2898_p2 = por %p2897_p1, %p2896_p0 }
 0xc8f   : > { %p2894_p13 = pneg %p2893_p12 }
 0xc91   : > { %p2899_p4 = pnand %p2898_p2, %p2894_p13 }
 0xc93   : > { %2902 = shalt.err (!%p2899_p4)
}
 0xc94   : > { %2754 = dma.vmem_to_hbm [thread:$0]  (%p3135_p3), %s2343_s25, 16, %s2340_s8, %s2327_s18  }
 0xc95 PF: > { %s3654_s11 = sld [smem:[#allocation11_spill]] }
 0xc96   : > { %s3655_s13 = sld [smem:[#allocation5_spill]] }
 0xc9b   : > { %p2760_p5 = scmp.ge.s32.totalorder %s3654_s11, 2 }
 0xc9c   : > { %s2361_s19 = sand.u32 1, %s3655_s13  }
 0xc9d   : > { %p2757_p6 = pnand %p2760_p5, %p3145_p9  ;;  %s2362_s16 = scalar_lea.sflag [#allocation3], %s2361_s19 }
 0xc9f   : > { %p2758_p7 = pneg %p2757_p6 }
 0xca1   : > { %2936 = dma.done.wait (%p2758_p7), %s2362_s16, 16  }
 0xca2   : > { %2938 = vsyncadd (%p2758_p7), %s2362_s16, 4294967280  ;;  %s33_s23 = sadd.s32 1, %s3654_s11   ;;  %s3657_s17 = sld [smem:[#allocation6_spill]] }
 0xca3   : > { %p30_p8 = scmp.ge.s32.totalorder %s33_s23, 6   ;;  %s3658_s20 = sld [smem:[#allocation16_spill]] }
 0xca4   : > { %s3659_s21 = sld [smem:[#allocation9_spill]]  ;;  %s3663_s0 = smov %s2945_s30 }
 0xca5   : > { %s3660_s1 = sld [smem:[#allocation10_spill]]  ;;  %32 = sbr.rel (!%p30_p8) target bundleno = 21 (0x15), region = 186 }
 0xca6   : > { %s3661_s22 = sld [smem:[#allocation12_spill]] }
 0xca7   : > { %s3662_s2 = sld [smem:[#allocation14_spill]] }
 0xca8   : > { %s3664_s30 = smov %s3657_s17 }
 0xcaa   :  { %2366 = vsyncpa [#allocation3], 1 }
 0xcab   :  { %2368 = vsyncpa [#allocation3 + $0x1], 1 }

</bundles_post_ra>
